<compile_context>
chip_gen: v6e
topology: v6e:2x2x1
jax: 0.10.0
libtpu: 0.0.40
codegen_flags: <defaults>
</compile_context>

<pallas_src>
import jax
import jax.numpy as jnp
from jax.experimental import pallas as pl
from jax.experimental.pallas import tpu as pltpu

BIGNET_DIM = 128          # small, TPU-friendly stand-in for the module's BIGNET_DIM
NUM_BLOCKS = 6            # Block, LN, Block, LN, Block, LN, Block, LN, Block, LN, Block
NUM_LN = NUM_BLOCKS - 1   # 5 LayerNorms between the 6 blocks
LN_EPS = 1e-5
HALF = jnp.bfloat16


def _half_bignet_kernel(x_ref, w_ref, b_ref, g_ref, beta_ref, o_ref):
    """One grid step processes a (tm, C) tile of rows through the whole network.

    x_ref   : (tm, C)        float32   activations tile
    w_ref   : (6, 3, C, C)   bfloat16  weights, already [in, out]
    b_ref   : (18, C)        float32   biases (half-precision values stored fp32)
    g_ref   : (5, C)         float32   LayerNorm gamma
    beta_ref: (5, C)         float32   LayerNorm beta
    o_ref   : (tm, C)        float32   output tile
    """
    x = x_ref[...]                                   # fp32
    inv_c = jnp.float32(1.0 / BIGNET_DIM)

    for blk in range(NUM_BLOCKS):
        h = x.astype(HALF)                           # HalfLinear input cast
        for li in range(3):
            w = w_ref[blk, li]                       # (C, C) half, [in, out]
            b = b_ref[pl.ds(blk * 3 + li, 1), :]     # (1, C) fp32
            y = jnp.dot(h, w, preferred_element_type=jnp.float32)   # MXU
            y = y + b
            if li < 2:
                # ReLU in fp32 before the half round (bit-equivalent; avoids
                # packed-bf16 max on v5e's fp32-only VPU).
                y = jnp.maximum(y, 0.0)
            h = y.astype(HALF)                       # HalfLinear output precision
        # residual in full precision
        x = x + h.astype(jnp.float32)

        if blk < NUM_LN:
            # Fused single-pass LayerNorm in float32 (biased variance, eps=1e-5):
            #   one sweep -> sum(x), sum(x*x); fold gamma into the rsqrt scale.
            sx = jnp.sum(x, axis=-1, keepdims=True)          # XLU
            sxx = jnp.sum(x * x, axis=-1, keepdims=True)     # XLU
            mean = sx * inv_c
            var = sxx * inv_c - mean * mean
            r = jax.lax.rsqrt(var + LN_EPS)                  # (tm, 1)  EUP
            g = g_ref[pl.ds(blk, 1), :]                      # (1, C)
            beta = beta_ref[pl.ds(blk, 1), :]                # (1, C)
            scale = g * r                                    # (tm, C)
            x = x * scale + (beta - mean * scale)

    o_ref[...] = x


def _choose_tm(M):
    """Row tile: as large as possible (amortize ~0.35us/step overhead, stream a
    long LHS through each of the 18 weight pushes), but with >= 2 grid steps
    when M allows so the 'parallel' grid axis can shard across both v7x
    TensorCores.  VMEM never constrains the tile here (~0.8 MiB params +
    ~0.5 MiB per (1024,128) fp32 buffer)."""
    if M <= 256:
        return M
    if M <= 2048:
        return pl.cdiv(M, 2)
    return 1024


def half_bignet(x, weights, biases, gammas, betas, *, tm=None):
    """x: (M, C) float32.
    weights: (6,3,C,C) half, [in,out].  biases: (18,C) float32.
    gammas/betas: (5,C) float32."""
    M, C = x.shape
    assert C == BIGNET_DIM

    if tm is None:
        tm = _choose_tm(M)
    tm = max(8, ((int(tm) + 7) // 8) * 8)        # sublane-align the row tile
    m_pad = pl.cdiv(M, tm) * tm
    if m_pad != M:
        x = jnp.pad(x, ((0, m_pad - M), (0, 0)))  # padded rows computed, then dropped

    grid = (m_pad // tm,)

    # Advisory cost hint: 18 (tm x C x C) matmuls per row tile, 5 rsqrt per row.
    cost = pl.CostEstimate(
        flops=2 * NUM_BLOCKS * 3 * m_pad * C * C,
        transcendentals=NUM_LN * m_pad,
        bytes_accessed=(2 * m_pad * C * 4            # x in + out (fp32)
                        + weights.size * 2           # bf16 weights
                        + (biases.size + gammas.size + betas.size) * 4),
    )

    out = pl.pallas_call(
        _half_bignet_kernel,
        out_shape=jax.ShapeDtypeStruct((m_pad, C), jnp.float32),
        grid_spec=pltpu.PrefetchScalarGridSpec(
            num_scalar_prefetch=0,
            grid=grid,
            in_specs=[
                pl.BlockSpec((tm, C), lambda i: (i, 0)),
                # Parameters: full-array blocks, constant index_map -> resident
                # across grid steps (default revisit handling keeps them cached).
                pl.BlockSpec((NUM_BLOCKS, 3, C, C), lambda i: (0, 0, 0, 0)),
                pl.BlockSpec((NUM_BLOCKS * 3, C), lambda i: (0, 0)),
                pl.BlockSpec((NUM_LN, C), lambda i: (0, 0)),
                pl.BlockSpec((NUM_LN, C), lambda i: (0, 0)),
            ],
            out_specs=pl.BlockSpec((tm, C), lambda i: (i, 0)),
        ),
        compiler_params=pltpu.CompilerParams(
            dimension_semantics=("parallel",),
        ),
        cost_estimate=cost,
    )(x, weights, biases, gammas, betas)

    return out[:M] if m_pad != M else out


def init_params(key, channels):
    """Deterministic parameter init mirroring the module's __init__ shapes.

    HalfLinear: weight (out, in) ~ randn (half), bias (out,) ~ randn (half).
    LayerNorm : gamma/beta float32.
    Biases are quantized to half (the parameter dtype) but stored fp32 for the
    kernel since they are added in fp32 anyway.
    """
    kw, kb, kg, kbeta = jax.random.split(key, 4)
    # torch layout is (out_features, in_features); pre-transpose to (in, out) for x @ W.
    w_torch = jax.random.normal(kw, (NUM_BLOCKS, 3, channels, channels), jnp.float32)
    weights = jnp.swapaxes(w_torch, -1, -2).astype(HALF)                   # (6,3,in,out)
    biases = (jax.random.normal(kb, (NUM_BLOCKS * 3, channels), jnp.float32)
              .astype(HALF).astype(jnp.float32))                           # (18,C) fp32
    gammas = 1.0 + 0.1 * jax.random.normal(kg, (NUM_LN, channels), jnp.float32)
    betas = 0.1 * jax.random.normal(kbeta, (NUM_LN, channels), jnp.float32)
    return weights, biases, gammas, betas


if __name__ == "__main__":
    key = jax.random.PRNGKey(0)
    kx, kp = jax.random.split(key)

    batch = 16
    x = jax.random.normal(kx, (batch, BIGNET_DIM), jnp.float32)
    weights, biases, gammas, betas = init_params(kp, BIGNET_DIM)

    out = half_bignet(x, weights, biases, gammas, betas)
    out = jax.block_until_ready(out)

    assert out.shape == (batch, BIGNET_DIM) and out.dtype == jnp.float32
    assert bool(jnp.all(jnp.isfinite(out)))
    print("KERNEL_OK")
</pallas_src>

<mosaic_0001>
module attributes {stable_mosaic.version = 11 : i64} {
  func.func @_half_bignet_kernel(%arg0: i32, %arg1: memref<16x128xf32, #tpu.memory_space<vmem>>, %arg2: memref<6x3x128x128xbf16, #tpu.memory_space<vmem>>, %arg3: memref<18x128xf32, #tpu.memory_space<vmem>>, %arg4: memref<5x128xf32, #tpu.memory_space<vmem>>, %arg5: memref<5x128xf32, #tpu.memory_space<vmem>>, %arg6: memref<16x128xf32, #tpu.memory_space<vmem>>) attributes {dimension_semantics = [#tpu.dimension_semantics<parallel>], iteration_bounds = array<i64: 1>, scalar_prefetch = 0 : i64, scratch_operands = 0 : i64, tpu.core_type = #tpu.core_type<tc>, window_params = [{transform_indices = @transform_0, window_bounds = array<i64: 16, 128>}, {pipeline_mode = #tpu.pipeline_mode<synchronous>, transform_indices = @transform_1, window_bounds = array<i64: 6, 3, 128, 128>}, {pipeline_mode = #tpu.pipeline_mode<synchronous>, transform_indices = @transform_2, window_bounds = array<i64: 18, 128>}, {pipeline_mode = #tpu.pipeline_mode<synchronous>, transform_indices = @transform_3, window_bounds = array<i64: 5, 128>}, {pipeline_mode = #tpu.pipeline_mode<synchronous>, transform_indices = @transform_4, window_bounds = array<i64: 5, 128>}, {transform_indices = @transform_5, window_bounds = array<i64: 16, 128>}]} {
    %c0 = arith.constant 0 : index
    %c0_0 = arith.constant 0 : index
    %0 = vector.load %arg1[%c0, %c0_0] : memref<16x128xf32, #tpu.memory_space<vmem>>, vector<16x128xf32>
    %1 = arith.truncf %0 : vector<16x128xf32> to vector<16x128xbf16>
    %c0_1 = arith.constant 0 : index
    %c0_2 = arith.constant 0 : index
    %c0_3 = arith.constant 0 : index
    %c0_4 = arith.constant 0 : index
    %2 = vector.load %arg2[%c0_1, %c0_2, %c0_3, %c0_4] : memref<6x3x128x128xbf16, #tpu.memory_space<vmem>>, vector<1x1x128x128xbf16>
    %3 = vector.shape_cast %2 : vector<1x1x128x128xbf16> to vector<128x128xbf16>
    %c0_5 = arith.constant 0 : index
    %c0_6 = arith.constant 0 : index
    %4 = vector.load %arg3[%c0_5, %c0_6] : memref<18x128xf32, #tpu.memory_space<vmem>>, vector<1x128xf32>
    %cst = arith.constant dense<0.000000e+00> : vector<16x128xf32>
    %5 = tpu.matmul %1, %3, %cst {dimension_numbers = #tpu.dot_dimension_numbers<[1], [0], [0], [1], [0, 0, 1, 1], [], []>} : vector<16x128xbf16>, vector<128x128xbf16>, vector<16x128xf32> -> vector<16x128xf32>
    %6 = vector.broadcast %4 : vector<1x128xf32> to vector<16x128xf32>
    %7 = arith.addf %5, %6 : vector<16x128xf32>
    %cst_7 = arith.constant 0.000000e+00 : f32
    %8 = vector.broadcast %cst_7 : f32 to vector<16x128xf32>
    %9 = arith.maximumf %7, %8 : vector<16x128xf32>
    %10 = arith.truncf %9 : vector<16x128xf32> to vector<16x128xbf16>
    %c0_8 = arith.constant 0 : index
    %c1 = arith.constant 1 : index
    %c0_9 = arith.constant 0 : index
    %c0_10 = arith.constant 0 : index
    %11 = vector.load %arg2[%c0_8, %c1, %c0_9, %c0_10] : memref<6x3x128x128xbf16, #tpu.memory_space<vmem>>, vector<1x1x128x128xbf16>
    %12 = vector.shape_cast %11 : vector<1x1x128x128xbf16> to vector<128x128xbf16>
    %c1_11 = arith.constant 1 : index
    %c0_12 = arith.constant 0 : index
    %13 = vector.load %arg3[%c1_11, %c0_12] : memref<18x128xf32, #tpu.memory_space<vmem>>, vector<1x128xf32>
    %cst_13 = arith.constant dense<0.000000e+00> : vector<16x128xf32>
    %14 = tpu.matmul %10, %12, %cst_13 {dimension_numbers = #tpu.dot_dimension_numbers<[1], [0], [0], [1], [0, 0, 1, 1], [], []>} : vector<16x128xbf16>, vector<128x128xbf16>, vector<16x128xf32> -> vector<16x128xf32>
    %15 = vector.broadcast %13 : vector<1x128xf32> to vector<16x128xf32>
    %16 = arith.addf %14, %15 : vector<16x128xf32>
    %cst_14 = arith.constant 0.000000e+00 : f32
    %17 = vector.broadcast %cst_14 : f32 to vector<16x128xf32>
    %18 = arith.maximumf %16, %17 : vector<16x128xf32>
    %19 = arith.truncf %18 : vector<16x128xf32> to vector<16x128xbf16>
    %c0_15 = arith.constant 0 : index
    %c2 = arith.constant 2 : index
    %c0_16 = arith.constant 0 : index
    %c0_17 = arith.constant 0 : index
    %20 = vector.load %arg2[%c0_15, %c2, %c0_16, %c0_17] : memref<6x3x128x128xbf16, #tpu.memory_space<vmem>>, vector<1x1x128x128xbf16>
    %21 = vector.shape_cast %20 : vector<1x1x128x128xbf16> to vector<128x128xbf16>
    %c2_18 = arith.constant 2 : index
    %c0_19 = arith.constant 0 : index
    %22 = vector.load %arg3[%c2_18, %c0_19] : memref<18x128xf32, #tpu.memory_space<vmem>>, vector<1x128xf32>
    %cst_20 = arith.constant dense<0.000000e+00> : vector<16x128xf32>
    %23 = tpu.matmul %19, %21, %cst_20 {dimension_numbers = #tpu.dot_dimension_numbers<[1], [0], [0], [1], [0, 0, 1, 1], [], []>} : vector<16x128xbf16>, vector<128x128xbf16>, vector<16x128xf32> -> vector<16x128xf32>
    %24 = vector.broadcast %22 : vector<1x128xf32> to vector<16x128xf32>
    %25 = arith.addf %23, %24 : vector<16x128xf32>
    %26 = arith.truncf %25 : vector<16x128xf32> to vector<16x128xbf16>
    %27 = arith.extf %26 : vector<16x128xbf16> to vector<16x128xf32>
    %28 = arith.addf %0, %27 : vector<16x128xf32>
    %cst_21 = arith.constant dense<0.000000e+00> : vector<16xf32>
    %29 = vector.multi_reduction <add>, %28, %cst_21 [1] : vector<16x128xf32> to vector<16xf32>
    %30 = vector.shape_cast %29 : vector<16xf32> to vector<16x1xf32>
    %31 = arith.mulf %28, %28 : vector<16x128xf32>
    %cst_22 = arith.constant dense<0.000000e+00> : vector<16xf32>
    %32 = vector.multi_reduction <add>, %31, %cst_22 [1] : vector<16x128xf32> to vector<16xf32>
    %33 = vector.shape_cast %32 : vector<16xf32> to vector<16x1xf32>
    %cst_23 = arith.constant 7.812500e-03 : f32
    %34 = vector.broadcast %cst_23 : f32 to vector<16x1xf32>
    %35 = arith.mulf %30, %34 : vector<16x1xf32>
    %cst_24 = arith.constant 7.812500e-03 : f32
    %36 = vector.broadcast %cst_24 : f32 to vector<16x1xf32>
    %37 = arith.mulf %33, %36 : vector<16x1xf32>
    %38 = arith.mulf %35, %35 : vector<16x1xf32>
    %39 = arith.subf %37, %38 : vector<16x1xf32>
    %cst_25 = arith.constant 9.99999974E-6 : f32
    %40 = vector.broadcast %cst_25 : f32 to vector<16x1xf32>
    %41 = arith.addf %39, %40 : vector<16x1xf32>
    %42 = math.rsqrt %41 : vector<16x1xf32>
    %c0_26 = arith.constant 0 : index
    %c0_27 = arith.constant 0 : index
    %43 = vector.load %arg4[%c0_26, %c0_27] : memref<5x128xf32, #tpu.memory_space<vmem>>, vector<1x128xf32>
    %c0_28 = arith.constant 0 : index
    %c0_29 = arith.constant 0 : index
    %44 = vector.load %arg5[%c0_28, %c0_29] : memref<5x128xf32, #tpu.memory_space<vmem>>, vector<1x128xf32>
    %45 = vector.broadcast %43 : vector<1x128xf32> to vector<16x128xf32>
    %46 = vector.broadcast %42 : vector<16x1xf32> to vector<16x128xf32>
    %47 = arith.mulf %45, %46 : vector<16x128xf32>
    %48 = arith.mulf %28, %47 : vector<16x128xf32>
    %49 = vector.broadcast %35 : vector<16x1xf32> to vector<16x128xf32>
    %50 = arith.mulf %49, %47 : vector<16x128xf32>
    %51 = vector.broadcast %44 : vector<1x128xf32> to vector<16x128xf32>
    %52 = arith.subf %51, %50 : vector<16x128xf32>
    %53 = arith.addf %48, %52 : vector<16x128xf32>
    %54 = arith.truncf %53 : vector<16x128xf32> to vector<16x128xbf16>
    %c1_30 = arith.constant 1 : index
    %c0_31 = arith.constant 0 : index
    %c0_32 = arith.constant 0 : index
    %c0_33 = arith.constant 0 : index
    %55 = vector.load %arg2[%c1_30, %c0_31, %c0_32, %c0_33] : memref<6x3x128x128xbf16, #tpu.memory_space<vmem>>, vector<1x1x128x128xbf16>
    %56 = vector.shape_cast %55 : vector<1x1x128x128xbf16> to vector<128x128xbf16>
    %c3 = arith.constant 3 : index
    %c0_34 = arith.constant 0 : index
    %57 = vector.load %arg3[%c3, %c0_34] : memref<18x128xf32, #tpu.memory_space<vmem>>, vector<1x128xf32>
    %cst_35 = arith.constant dense<0.000000e+00> : vector<16x128xf32>
    %58 = tpu.matmul %54, %56, %cst_35 {dimension_numbers = #tpu.dot_dimension_numbers<[1], [0], [0], [1], [0, 0, 1, 1], [], []>} : vector<16x128xbf16>, vector<128x128xbf16>, vector<16x128xf32> -> vector<16x128xf32>
    %59 = vector.broadcast %57 : vector<1x128xf32> to vector<16x128xf32>
    %60 = arith.addf %58, %59 : vector<16x128xf32>
    %cst_36 = arith.constant 0.000000e+00 : f32
    %61 = vector.broadcast %cst_36 : f32 to vector<16x128xf32>
    %62 = arith.maximumf %60, %61 : vector<16x128xf32>
    %63 = arith.truncf %62 : vector<16x128xf32> to vector<16x128xbf16>
    %c1_37 = arith.constant 1 : index
    %c1_38 = arith.constant 1 : index
    %c0_39 = arith.constant 0 : index
    %c0_40 = arith.constant 0 : index
    %64 = vector.load %arg2[%c1_37, %c1_38, %c0_39, %c0_40] : memref<6x3x128x128xbf16, #tpu.memory_space<vmem>>, vector<1x1x128x128xbf16>
    %65 = vector.shape_cast %64 : vector<1x1x128x128xbf16> to vector<128x128xbf16>
    %c4 = arith.constant 4 : index
    %c0_41 = arith.constant 0 : index
    %66 = vector.load %arg3[%c4, %c0_41] : memref<18x128xf32, #tpu.memory_space<vmem>>, vector<1x128xf32>
    %cst_42 = arith.constant dense<0.000000e+00> : vector<16x128xf32>
    %67 = tpu.matmul %63, %65, %cst_42 {dimension_numbers = #tpu.dot_dimension_numbers<[1], [0], [0], [1], [0, 0, 1, 1], [], []>} : vector<16x128xbf16>, vector<128x128xbf16>, vector<16x128xf32> -> vector<16x128xf32>
    %68 = vector.broadcast %66 : vector<1x128xf32> to vector<16x128xf32>
    %69 = arith.addf %67, %68 : vector<16x128xf32>
    %cst_43 = arith.constant 0.000000e+00 : f32
    %70 = vector.broadcast %cst_43 : f32 to vector<16x128xf32>
    %71 = arith.maximumf %69, %70 : vector<16x128xf32>
    %72 = arith.truncf %71 : vector<16x128xf32> to vector<16x128xbf16>
    %c1_44 = arith.constant 1 : index
    %c2_45 = arith.constant 2 : index
    %c0_46 = arith.constant 0 : index
    %c0_47 = arith.constant 0 : index
    %73 = vector.load %arg2[%c1_44, %c2_45, %c0_46, %c0_47] : memref<6x3x128x128xbf16, #tpu.memory_space<vmem>>, vector<1x1x128x128xbf16>
    %74 = vector.shape_cast %73 : vector<1x1x128x128xbf16> to vector<128x128xbf16>
    %c5 = arith.constant 5 : index
    %c0_48 = arith.constant 0 : index
    %75 = vector.load %arg3[%c5, %c0_48] : memref<18x128xf32, #tpu.memory_space<vmem>>, vector<1x128xf32>
    %cst_49 = arith.constant dense<0.000000e+00> : vector<16x128xf32>
    %76 = tpu.matmul %72, %74, %cst_49 {dimension_numbers = #tpu.dot_dimension_numbers<[1], [0], [0], [1], [0, 0, 1, 1], [], []>} : vector<16x128xbf16>, vector<128x128xbf16>, vector<16x128xf32> -> vector<16x128xf32>
    %77 = vector.broadcast %75 : vector<1x128xf32> to vector<16x128xf32>
    %78 = arith.addf %76, %77 : vector<16x128xf32>
    %79 = arith.truncf %78 : vector<16x128xf32> to vector<16x128xbf16>
    %80 = arith.extf %79 : vector<16x128xbf16> to vector<16x128xf32>
    %81 = arith.addf %53, %80 : vector<16x128xf32>
    %cst_50 = arith.constant dense<0.000000e+00> : vector<16xf32>
    %82 = vector.multi_reduction <add>, %81, %cst_50 [1] : vector<16x128xf32> to vector<16xf32>
    %83 = vector.shape_cast %82 : vector<16xf32> to vector<16x1xf32>
    %84 = arith.mulf %81, %81 : vector<16x128xf32>
    %cst_51 = arith.constant dense<0.000000e+00> : vector<16xf32>
    %85 = vector.multi_reduction <add>, %84, %cst_51 [1] : vector<16x128xf32> to vector<16xf32>
    %86 = vector.shape_cast %85 : vector<16xf32> to vector<16x1xf32>
    %cst_52 = arith.constant 7.812500e-03 : f32
    %87 = vector.broadcast %cst_52 : f32 to vector<16x1xf32>
    %88 = arith.mulf %83, %87 : vector<16x1xf32>
    %cst_53 = arith.constant 7.812500e-03 : f32
    %89 = vector.broadcast %cst_53 : f32 to vector<16x1xf32>
    %90 = arith.mulf %86, %89 : vector<16x1xf32>
    %91 = arith.mulf %88, %88 : vector<16x1xf32>
    %92 = arith.subf %90, %91 : vector<16x1xf32>
    %cst_54 = arith.constant 9.99999974E-6 : f32
    %93 = vector.broadcast %cst_54 : f32 to vector<16x1xf32>
    %94 = arith.addf %92, %93 : vector<16x1xf32>
    %95 = math.rsqrt %94 : vector<16x1xf32>
    %c1_55 = arith.constant 1 : index
    %c0_56 = arith.constant 0 : index
    %96 = vector.load %arg4[%c1_55, %c0_56] : memref<5x128xf32, #tpu.memory_space<vmem>>, vector<1x128xf32>
    %c1_57 = arith.constant 1 : index
    %c0_58 = arith.constant 0 : index
    %97 = vector.load %arg5[%c1_57, %c0_58] : memref<5x128xf32, #tpu.memory_space<vmem>>, vector<1x128xf32>
    %98 = vector.broadcast %96 : vector<1x128xf32> to vector<16x128xf32>
    %99 = vector.broadcast %95 : vector<16x1xf32> to vector<16x128xf32>
    %100 = arith.mulf %98, %99 : vector<16x128xf32>
    %101 = arith.mulf %81, %100 : vector<16x128xf32>
    %102 = vector.broadcast %88 : vector<16x1xf32> to vector<16x128xf32>
    %103 = arith.mulf %102, %100 : vector<16x128xf32>
    %104 = vector.broadcast %97 : vector<1x128xf32> to vector<16x128xf32>
    %105 = arith.subf %104, %103 : vector<16x128xf32>
    %106 = arith.addf %101, %105 : vector<16x128xf32>
    %107 = arith.truncf %106 : vector<16x128xf32> to vector<16x128xbf16>
    %c2_59 = arith.constant 2 : index
    %c0_60 = arith.constant 0 : index
    %c0_61 = arith.constant 0 : index
    %c0_62 = arith.constant 0 : index
    %108 = vector.load %arg2[%c2_59, %c0_60, %c0_61, %c0_62] : memref<6x3x128x128xbf16, #tpu.memory_space<vmem>>, vector<1x1x128x128xbf16>
    %109 = vector.shape_cast %108 : vector<1x1x128x128xbf16> to vector<128x128xbf16>
    %c6 = arith.constant 6 : index
    %c0_63 = arith.constant 0 : index
    %110 = vector.load %arg3[%c6, %c0_63] : memref<18x128xf32, #tpu.memory_space<vmem>>, vector<1x128xf32>
    %cst_64 = arith.constant dense<0.000000e+00> : vector<16x128xf32>
    %111 = tpu.matmul %107, %109, %cst_64 {dimension_numbers = #tpu.dot_dimension_numbers<[1], [0], [0], [1], [0, 0, 1, 1], [], []>} : vector<16x128xbf16>, vector<128x128xbf16>, vector<16x128xf32> -> vector<16x128xf32>
    %112 = vector.broadcast %110 : vector<1x128xf32> to vector<16x128xf32>
    %113 = arith.addf %111, %112 : vector<16x128xf32>
    %cst_65 = arith.constant 0.000000e+00 : f32
    %114 = vector.broadcast %cst_65 : f32 to vector<16x128xf32>
    %115 = arith.maximumf %113, %114 : vector<16x128xf32>
    %116 = arith.truncf %115 : vector<16x128xf32> to vector<16x128xbf16>
    %c2_66 = arith.constant 2 : index
    %c1_67 = arith.constant 1 : index
    %c0_68 = arith.constant 0 : index
    %c0_69 = arith.constant 0 : index
    %117 = vector.load %arg2[%c2_66, %c1_67, %c0_68, %c0_69] : memref<6x3x128x128xbf16, #tpu.memory_space<vmem>>, vector<1x1x128x128xbf16>
    %118 = vector.shape_cast %117 : vector<1x1x128x128xbf16> to vector<128x128xbf16>
    %c7 = arith.constant 7 : index
    %c0_70 = arith.constant 0 : index
    %119 = vector.load %arg3[%c7, %c0_70] : memref<18x128xf32, #tpu.memory_space<vmem>>, vector<1x128xf32>
    %cst_71 = arith.constant dense<0.000000e+00> : vector<16x128xf32>
    %120 = tpu.matmul %116, %118, %cst_71 {dimension_numbers = #tpu.dot_dimension_numbers<[1], [0], [0], [1], [0, 0, 1, 1], [], []>} : vector<16x128xbf16>, vector<128x128xbf16>, vector<16x128xf32> -> vector<16x128xf32>
    %121 = vector.broadcast %119 : vector<1x128xf32> to vector<16x128xf32>
    %122 = arith.addf %120, %121 : vector<16x128xf32>
    %cst_72 = arith.constant 0.000000e+00 : f32
    %123 = vector.broadcast %cst_72 : f32 to vector<16x128xf32>
    %124 = arith.maximumf %122, %123 : vector<16x128xf32>
    %125 = arith.truncf %124 : vector<16x128xf32> to vector<16x128xbf16>
    %c2_73 = arith.constant 2 : index
    %c2_74 = arith.constant 2 : index
    %c0_75 = arith.constant 0 : index
    %c0_76 = arith.constant 0 : index
    %126 = vector.load %arg2[%c2_73, %c2_74, %c0_75, %c0_76] : memref<6x3x128x128xbf16, #tpu.memory_space<vmem>>, vector<1x1x128x128xbf16>
    %127 = vector.shape_cast %126 : vector<1x1x128x128xbf16> to vector<128x128xbf16>
    %c8 = arith.constant 8 : index
    %c0_77 = arith.constant 0 : index
    %128 = vector.load %arg3[%c8, %c0_77] : memref<18x128xf32, #tpu.memory_space<vmem>>, vector<1x128xf32>
    %cst_78 = arith.constant dense<0.000000e+00> : vector<16x128xf32>
    %129 = tpu.matmul %125, %127, %cst_78 {dimension_numbers = #tpu.dot_dimension_numbers<[1], [0], [0], [1], [0, 0, 1, 1], [], []>} : vector<16x128xbf16>, vector<128x128xbf16>, vector<16x128xf32> -> vector<16x128xf32>
    %130 = vector.broadcast %128 : vector<1x128xf32> to vector<16x128xf32>
    %131 = arith.addf %129, %130 : vector<16x128xf32>
    %132 = arith.truncf %131 : vector<16x128xf32> to vector<16x128xbf16>
    %133 = arith.extf %132 : vector<16x128xbf16> to vector<16x128xf32>
    %134 = arith.addf %106, %133 : vector<16x128xf32>
    %cst_79 = arith.constant dense<0.000000e+00> : vector<16xf32>
    %135 = vector.multi_reduction <add>, %134, %cst_79 [1] : vector<16x128xf32> to vector<16xf32>
    %136 = vector.shape_cast %135 : vector<16xf32> to vector<16x1xf32>
    %137 = arith.mulf %134, %134 : vector<16x128xf32>
    %cst_80 = arith.constant dense<0.000000e+00> : vector<16xf32>
    %138 = vector.multi_reduction <add>, %137, %cst_80 [1] : vector<16x128xf32> to vector<16xf32>
    %139 = vector.shape_cast %138 : vector<16xf32> to vector<16x1xf32>
    %cst_81 = arith.constant 7.812500e-03 : f32
    %140 = vector.broadcast %cst_81 : f32 to vector<16x1xf32>
    %141 = arith.mulf %136, %140 : vector<16x1xf32>
    %cst_82 = arith.constant 7.812500e-03 : f32
    %142 = vector.broadcast %cst_82 : f32 to vector<16x1xf32>
    %143 = arith.mulf %139, %142 : vector<16x1xf32>
    %144 = arith.mulf %141, %141 : vector<16x1xf32>
    %145 = arith.subf %143, %144 : vector<16x1xf32>
    %cst_83 = arith.constant 9.99999974E-6 : f32
    %146 = vector.broadcast %cst_83 : f32 to vector<16x1xf32>
    %147 = arith.addf %145, %146 : vector<16x1xf32>
    %148 = math.rsqrt %147 : vector<16x1xf32>
    %c2_84 = arith.constant 2 : index
    %c0_85 = arith.constant 0 : index
    %149 = vector.load %arg4[%c2_84, %c0_85] : memref<5x128xf32, #tpu.memory_space<vmem>>, vector<1x128xf32>
    %c2_86 = arith.constant 2 : index
    %c0_87 = arith.constant 0 : index
    %150 = vector.load %arg5[%c2_86, %c0_87] : memref<5x128xf32, #tpu.memory_space<vmem>>, vector<1x128xf32>
    %151 = vector.broadcast %149 : vector<1x128xf32> to vector<16x128xf32>
    %152 = vector.broadcast %148 : vector<16x1xf32> to vector<16x128xf32>
    %153 = arith.mulf %151, %152 : vector<16x128xf32>
    %154 = arith.mulf %134, %153 : vector<16x128xf32>
    %155 = vector.broadcast %141 : vector<16x1xf32> to vector<16x128xf32>
    %156 = arith.mulf %155, %153 : vector<16x128xf32>
    %157 = vector.broadcast %150 : vector<1x128xf32> to vector<16x128xf32>
    %158 = arith.subf %157, %156 : vector<16x128xf32>
    %159 = arith.addf %154, %158 : vector<16x128xf32>
    %160 = arith.truncf %159 : vector<16x128xf32> to vector<16x128xbf16>
    %c3_88 = arith.constant 3 : index
    %c0_89 = arith.constant 0 : index
    %c0_90 = arith.constant 0 : index
    %c0_91 = arith.constant 0 : index
    %161 = vector.load %arg2[%c3_88, %c0_89, %c0_90, %c0_91] : memref<6x3x128x128xbf16, #tpu.memory_space<vmem>>, vector<1x1x128x128xbf16>
    %162 = vector.shape_cast %161 : vector<1x1x128x128xbf16> to vector<128x128xbf16>
    %c9 = arith.constant 9 : index
    %c0_92 = arith.constant 0 : index
    %163 = vector.load %arg3[%c9, %c0_92] : memref<18x128xf32, #tpu.memory_space<vmem>>, vector<1x128xf32>
    %cst_93 = arith.constant dense<0.000000e+00> : vector<16x128xf32>
    %164 = tpu.matmul %160, %162, %cst_93 {dimension_numbers = #tpu.dot_dimension_numbers<[1], [0], [0], [1], [0, 0, 1, 1], [], []>} : vector<16x128xbf16>, vector<128x128xbf16>, vector<16x128xf32> -> vector<16x128xf32>
    %165 = vector.broadcast %163 : vector<1x128xf32> to vector<16x128xf32>
    %166 = arith.addf %164, %165 : vector<16x128xf32>
    %cst_94 = arith.constant 0.000000e+00 : f32
    %167 = vector.broadcast %cst_94 : f32 to vector<16x128xf32>
    %168 = arith.maximumf %166, %167 : vector<16x128xf32>
    %169 = arith.truncf %168 : vector<16x128xf32> to vector<16x128xbf16>
    %c3_95 = arith.constant 3 : index
    %c1_96 = arith.constant 1 : index
    %c0_97 = arith.constant 0 : index
    %c0_98 = arith.constant 0 : index
    %170 = vector.load %arg2[%c3_95, %c1_96, %c0_97, %c0_98] : memref<6x3x128x128xbf16, #tpu.memory_space<vmem>>, vector<1x1x128x128xbf16>
    %171 = vector.shape_cast %170 : vector<1x1x128x128xbf16> to vector<128x128xbf16>
    %c10 = arith.constant 10 : index
    %c0_99 = arith.constant 0 : index
    %172 = vector.load %arg3[%c10, %c0_99] : memref<18x128xf32, #tpu.memory_space<vmem>>, vector<1x128xf32>
    %cst_100 = arith.constant dense<0.000000e+00> : vector<16x128xf32>
    %173 = tpu.matmul %169, %171, %cst_100 {dimension_numbers = #tpu.dot_dimension_numbers<[1], [0], [0], [1], [0, 0, 1, 1], [], []>} : vector<16x128xbf16>, vector<128x128xbf16>, vector<16x128xf32> -> vector<16x128xf32>
    %174 = vector.broadcast %172 : vector<1x128xf32> to vector<16x128xf32>
    %175 = arith.addf %173, %174 : vector<16x128xf32>
    %cst_101 = arith.constant 0.000000e+00 : f32
    %176 = vector.broadcast %cst_101 : f32 to vector<16x128xf32>
    %177 = arith.maximumf %175, %176 : vector<16x128xf32>
    %178 = arith.truncf %177 : vector<16x128xf32> to vector<16x128xbf16>
    %c3_102 = arith.constant 3 : index
    %c2_103 = arith.constant 2 : index
    %c0_104 = arith.constant 0 : index
    %c0_105 = arith.constant 0 : index
    %179 = vector.load %arg2[%c3_102, %c2_103, %c0_104, %c0_105] : memref<6x3x128x128xbf16, #tpu.memory_space<vmem>>, vector<1x1x128x128xbf16>
    %180 = vector.shape_cast %179 : vector<1x1x128x128xbf16> to vector<128x128xbf16>
    %c11 = arith.constant 11 : index
    %c0_106 = arith.constant 0 : index
    %181 = vector.load %arg3[%c11, %c0_106] : memref<18x128xf32, #tpu.memory_space<vmem>>, vector<1x128xf32>
    %cst_107 = arith.constant dense<0.000000e+00> : vector<16x128xf32>
    %182 = tpu.matmul %178, %180, %cst_107 {dimension_numbers = #tpu.dot_dimension_numbers<[1], [0], [0], [1], [0, 0, 1, 1], [], []>} : vector<16x128xbf16>, vector<128x128xbf16>, vector<16x128xf32> -> vector<16x128xf32>
    %183 = vector.broadcast %181 : vector<1x128xf32> to vector<16x128xf32>
    %184 = arith.addf %182, %183 : vector<16x128xf32>
    %185 = arith.truncf %184 : vector<16x128xf32> to vector<16x128xbf16>
    %186 = arith.extf %185 : vector<16x128xbf16> to vector<16x128xf32>
    %187 = arith.addf %159, %186 : vector<16x128xf32>
    %cst_108 = arith.constant dense<0.000000e+00> : vector<16xf32>
    %188 = vector.multi_reduction <add>, %187, %cst_108 [1] : vector<16x128xf32> to vector<16xf32>
    %189 = vector.shape_cast %188 : vector<16xf32> to vector<16x1xf32>
    %190 = arith.mulf %187, %187 : vector<16x128xf32>
    %cst_109 = arith.constant dense<0.000000e+00> : vector<16xf32>
    %191 = vector.multi_reduction <add>, %190, %cst_109 [1] : vector<16x128xf32> to vector<16xf32>
    %192 = vector.shape_cast %191 : vector<16xf32> to vector<16x1xf32>
    %cst_110 = arith.constant 7.812500e-03 : f32
    %193 = vector.broadcast %cst_110 : f32 to vector<16x1xf32>
    %194 = arith.mulf %189, %193 : vector<16x1xf32>
    %cst_111 = arith.constant 7.812500e-03 : f32
    %195 = vector.broadcast %cst_111 : f32 to vector<16x1xf32>
    %196 = arith.mulf %192, %195 : vector<16x1xf32>
    %197 = arith.mulf %194, %194 : vector<16x1xf32>
    %198 = arith.subf %196, %197 : vector<16x1xf32>
    %cst_112 = arith.constant 9.99999974E-6 : f32
    %199 = vector.broadcast %cst_112 : f32 to vector<16x1xf32>
    %200 = arith.addf %198, %199 : vector<16x1xf32>
    %201 = math.rsqrt %200 : vector<16x1xf32>
    %c3_113 = arith.constant 3 : index
    %c0_114 = arith.constant 0 : index
    %202 = vector.load %arg4[%c3_113, %c0_114] : memref<5x128xf32, #tpu.memory_space<vmem>>, vector<1x128xf32>
    %c3_115 = arith.constant 3 : index
    %c0_116 = arith.constant 0 : index
    %203 = vector.load %arg5[%c3_115, %c0_116] : memref<5x128xf32, #tpu.memory_space<vmem>>, vector<1x128xf32>
    %204 = vector.broadcast %202 : vector<1x128xf32> to vector<16x128xf32>
    %205 = vector.broadcast %201 : vector<16x1xf32> to vector<16x128xf32>
    %206 = arith.mulf %204, %205 : vector<16x128xf32>
    %207 = arith.mulf %187, %206 : vector<16x128xf32>
    %208 = vector.broadcast %194 : vector<16x1xf32> to vector<16x128xf32>
    %209 = arith.mulf %208, %206 : vector<16x128xf32>
    %210 = vector.broadcast %203 : vector<1x128xf32> to vector<16x128xf32>
    %211 = arith.subf %210, %209 : vector<16x128xf32>
    %212 = arith.addf %207, %211 : vector<16x128xf32>
    %213 = arith.truncf %212 : vector<16x128xf32> to vector<16x128xbf16>
    %c4_117 = arith.constant 4 : index
    %c0_118 = arith.constant 0 : index
    %c0_119 = arith.constant 0 : index
    %c0_120 = arith.constant 0 : index
    %214 = vector.load %arg2[%c4_117, %c0_118, %c0_119, %c0_120] : memref<6x3x128x128xbf16, #tpu.memory_space<vmem>>, vector<1x1x128x128xbf16>
    %215 = vector.shape_cast %214 : vector<1x1x128x128xbf16> to vector<128x128xbf16>
    %c12 = arith.constant 12 : index
    %c0_121 = arith.constant 0 : index
    %216 = vector.load %arg3[%c12, %c0_121] : memref<18x128xf32, #tpu.memory_space<vmem>>, vector<1x128xf32>
    %cst_122 = arith.constant dense<0.000000e+00> : vector<16x128xf32>
    %217 = tpu.matmul %213, %215, %cst_122 {dimension_numbers = #tpu.dot_dimension_numbers<[1], [0], [0], [1], [0, 0, 1, 1], [], []>} : vector<16x128xbf16>, vector<128x128xbf16>, vector<16x128xf32> -> vector<16x128xf32>
    %218 = vector.broadcast %216 : vector<1x128xf32> to vector<16x128xf32>
    %219 = arith.addf %217, %218 : vector<16x128xf32>
    %cst_123 = arith.constant 0.000000e+00 : f32
    %220 = vector.broadcast %cst_123 : f32 to vector<16x128xf32>
    %221 = arith.maximumf %219, %220 : vector<16x128xf32>
    %222 = arith.truncf %221 : vector<16x128xf32> to vector<16x128xbf16>
    %c4_124 = arith.constant 4 : index
    %c1_125 = arith.constant 1 : index
    %c0_126 = arith.constant 0 : index
    %c0_127 = arith.constant 0 : index
    %223 = vector.load %arg2[%c4_124, %c1_125, %c0_126, %c0_127] : memref<6x3x128x128xbf16, #tpu.memory_space<vmem>>, vector<1x1x128x128xbf16>
    %224 = vector.shape_cast %223 : vector<1x1x128x128xbf16> to vector<128x128xbf16>
    %c13 = arith.constant 13 : index
    %c0_128 = arith.constant 0 : index
    %225 = vector.load %arg3[%c13, %c0_128] : memref<18x128xf32, #tpu.memory_space<vmem>>, vector<1x128xf32>
    %cst_129 = arith.constant dense<0.000000e+00> : vector<16x128xf32>
    %226 = tpu.matmul %222, %224, %cst_129 {dimension_numbers = #tpu.dot_dimension_numbers<[1], [0], [0], [1], [0, 0, 1, 1], [], []>} : vector<16x128xbf16>, vector<128x128xbf16>, vector<16x128xf32> -> vector<16x128xf32>
    %227 = vector.broadcast %225 : vector<1x128xf32> to vector<16x128xf32>
    %228 = arith.addf %226, %227 : vector<16x128xf32>
    %cst_130 = arith.constant 0.000000e+00 : f32
    %229 = vector.broadcast %cst_130 : f32 to vector<16x128xf32>
    %230 = arith.maximumf %228, %229 : vector<16x128xf32>
    %231 = arith.truncf %230 : vector<16x128xf32> to vector<16x128xbf16>
    %c4_131 = arith.constant 4 : index
    %c2_132 = arith.constant 2 : index
    %c0_133 = arith.constant 0 : index
    %c0_134 = arith.constant 0 : index
    %232 = vector.load %arg2[%c4_131, %c2_132, %c0_133, %c0_134] : memref<6x3x128x128xbf16, #tpu.memory_space<vmem>>, vector<1x1x128x128xbf16>
    %233 = vector.shape_cast %232 : vector<1x1x128x128xbf16> to vector<128x128xbf16>
    %c14 = arith.constant 14 : index
    %c0_135 = arith.constant 0 : index
    %234 = vector.load %arg3[%c14, %c0_135] : memref<18x128xf32, #tpu.memory_space<vmem>>, vector<1x128xf32>
    %cst_136 = arith.constant dense<0.000000e+00> : vector<16x128xf32>
    %235 = tpu.matmul %231, %233, %cst_136 {dimension_numbers = #tpu.dot_dimension_numbers<[1], [0], [0], [1], [0, 0, 1, 1], [], []>} : vector<16x128xbf16>, vector<128x128xbf16>, vector<16x128xf32> -> vector<16x128xf32>
    %236 = vector.broadcast %234 : vector<1x128xf32> to vector<16x128xf32>
    %237 = arith.addf %235, %236 : vector<16x128xf32>
    %238 = arith.truncf %237 : vector<16x128xf32> to vector<16x128xbf16>
    %239 = arith.extf %238 : vector<16x128xbf16> to vector<16x128xf32>
    %240 = arith.addf %212, %239 : vector<16x128xf32>
    %cst_137 = arith.constant dense<0.000000e+00> : vector<16xf32>
    %241 = vector.multi_reduction <add>, %240, %cst_137 [1] : vector<16x128xf32> to vector<16xf32>
    %242 = vector.shape_cast %241 : vector<16xf32> to vector<16x1xf32>
    %243 = arith.mulf %240, %240 : vector<16x128xf32>
    %cst_138 = arith.constant dense<0.000000e+00> : vector<16xf32>
    %244 = vector.multi_reduction <add>, %243, %cst_138 [1] : vector<16x128xf32> to vector<16xf32>
    %245 = vector.shape_cast %244 : vector<16xf32> to vector<16x1xf32>
    %cst_139 = arith.constant 7.812500e-03 : f32
    %246 = vector.broadcast %cst_139 : f32 to vector<16x1xf32>
    %247 = arith.mulf %242, %246 : vector<16x1xf32>
    %cst_140 = arith.constant 7.812500e-03 : f32
    %248 = vector.broadcast %cst_140 : f32 to vector<16x1xf32>
    %249 = arith.mulf %245, %248 : vector<16x1xf32>
    %250 = arith.mulf %247, %247 : vector<16x1xf32>
    %251 = arith.subf %249, %250 : vector<16x1xf32>
    %cst_141 = arith.constant 9.99999974E-6 : f32
    %252 = vector.broadcast %cst_141 : f32 to vector<16x1xf32>
    %253 = arith.addf %251, %252 : vector<16x1xf32>
    %254 = math.rsqrt %253 : vector<16x1xf32>
    %c4_142 = arith.constant 4 : index
    %c0_143 = arith.constant 0 : index
    %255 = vector.load %arg4[%c4_142, %c0_143] : memref<5x128xf32, #tpu.memory_space<vmem>>, vector<1x128xf32>
    %c4_144 = arith.constant 4 : index
    %c0_145 = arith.constant 0 : index
    %256 = vector.load %arg5[%c4_144, %c0_145] : memref<5x128xf32, #tpu.memory_space<vmem>>, vector<1x128xf32>
    %257 = vector.broadcast %255 : vector<1x128xf32> to vector<16x128xf32>
    %258 = vector.broadcast %254 : vector<16x1xf32> to vector<16x128xf32>
    %259 = arith.mulf %257, %258 : vector<16x128xf32>
    %260 = arith.mulf %240, %259 : vector<16x128xf32>
    %261 = vector.broadcast %247 : vector<16x1xf32> to vector<16x128xf32>
    %262 = arith.mulf %261, %259 : vector<16x128xf32>
    %263 = vector.broadcast %256 : vector<1x128xf32> to vector<16x128xf32>
    %264 = arith.subf %263, %262 : vector<16x128xf32>
    %265 = arith.addf %260, %264 : vector<16x128xf32>
    %266 = arith.truncf %265 : vector<16x128xf32> to vector<16x128xbf16>
    %c5_146 = arith.constant 5 : index
    %c0_147 = arith.constant 0 : index
    %c0_148 = arith.constant 0 : index
    %c0_149 = arith.constant 0 : index
    %267 = vector.load %arg2[%c5_146, %c0_147, %c0_148, %c0_149] : memref<6x3x128x128xbf16, #tpu.memory_space<vmem>>, vector<1x1x128x128xbf16>
    %268 = vector.shape_cast %267 : vector<1x1x128x128xbf16> to vector<128x128xbf16>
    %c15 = arith.constant 15 : index
    %c0_150 = arith.constant 0 : index
    %269 = vector.load %arg3[%c15, %c0_150] : memref<18x128xf32, #tpu.memory_space<vmem>>, vector<1x128xf32>
    %cst_151 = arith.constant dense<0.000000e+00> : vector<16x128xf32>
    %270 = tpu.matmul %266, %268, %cst_151 {dimension_numbers = #tpu.dot_dimension_numbers<[1], [0], [0], [1], [0, 0, 1, 1], [], []>} : vector<16x128xbf16>, vector<128x128xbf16>, vector<16x128xf32> -> vector<16x128xf32>
    %271 = vector.broadcast %269 : vector<1x128xf32> to vector<16x128xf32>
    %272 = arith.addf %270, %271 : vector<16x128xf32>
    %cst_152 = arith.constant 0.000000e+00 : f32
    %273 = vector.broadcast %cst_152 : f32 to vector<16x128xf32>
    %274 = arith.maximumf %272, %273 : vector<16x128xf32>
    %275 = arith.truncf %274 : vector<16x128xf32> to vector<16x128xbf16>
    %c5_153 = arith.constant 5 : index
    %c1_154 = arith.constant 1 : index
    %c0_155 = arith.constant 0 : index
    %c0_156 = arith.constant 0 : index
    %276 = vector.load %arg2[%c5_153, %c1_154, %c0_155, %c0_156] : memref<6x3x128x128xbf16, #tpu.memory_space<vmem>>, vector<1x1x128x128xbf16>
    %277 = vector.shape_cast %276 : vector<1x1x128x128xbf16> to vector<128x128xbf16>
    %c16 = arith.constant 16 : index
    %c0_157 = arith.constant 0 : index
    %278 = vector.load %arg3[%c16, %c0_157] : memref<18x128xf32, #tpu.memory_space<vmem>>, vector<1x128xf32>
    %cst_158 = arith.constant dense<0.000000e+00> : vector<16x128xf32>
    %279 = tpu.matmul %275, %277, %cst_158 {dimension_numbers = #tpu.dot_dimension_numbers<[1], [0], [0], [1], [0, 0, 1, 1], [], []>} : vector<16x128xbf16>, vector<128x128xbf16>, vector<16x128xf32> -> vector<16x128xf32>
    %280 = vector.broadcast %278 : vector<1x128xf32> to vector<16x128xf32>
    %281 = arith.addf %279, %280 : vector<16x128xf32>
    %cst_159 = arith.constant 0.000000e+00 : f32
    %282 = vector.broadcast %cst_159 : f32 to vector<16x128xf32>
    %283 = arith.maximumf %281, %282 : vector<16x128xf32>
    %284 = arith.truncf %283 : vector<16x128xf32> to vector<16x128xbf16>
    %c5_160 = arith.constant 5 : index
    %c2_161 = arith.constant 2 : index
    %c0_162 = arith.constant 0 : index
    %c0_163 = arith.constant 0 : index
    %285 = vector.load %arg2[%c5_160, %c2_161, %c0_162, %c0_163] : memref<6x3x128x128xbf16, #tpu.memory_space<vmem>>, vector<1x1x128x128xbf16>
    %286 = vector.shape_cast %285 : vector<1x1x128x128xbf16> to vector<128x128xbf16>
    %c17 = arith.constant 17 : index
    %c0_164 = arith.constant 0 : index
    %287 = vector.load %arg3[%c17, %c0_164] : memref<18x128xf32, #tpu.memory_space<vmem>>, vector<1x128xf32>
    %cst_165 = arith.constant dense<0.000000e+00> : vector<16x128xf32>
    %288 = tpu.matmul %284, %286, %cst_165 {dimension_numbers = #tpu.dot_dimension_numbers<[1], [0], [0], [1], [0, 0, 1, 1], [], []>} : vector<16x128xbf16>, vector<128x128xbf16>, vector<16x128xf32> -> vector<16x128xf32>
    %289 = vector.broadcast %287 : vector<1x128xf32> to vector<16x128xf32>
    %290 = arith.addf %288, %289 : vector<16x128xf32>
    %291 = arith.truncf %290 : vector<16x128xf32> to vector<16x128xbf16>
    %292 = arith.extf %291 : vector<16x128xbf16> to vector<16x128xf32>
    %293 = arith.addf %265, %292 : vector<16x128xf32>
    %c0_166 = arith.constant 0 : index
    %c0_167 = arith.constant 0 : index
    %294 = vector.load %arg6[%c0_166, %c0_167] : memref<16x128xf32, #tpu.memory_space<vmem>>, vector<16x128xf32>
    tpu.vector_store %arg6[%c0_166, %c0_167], %293 {strides = array<i32>} : memref<16x128xf32, #tpu.memory_space<vmem>>, vector<16x128xf32>,
    return
  }
  func.func @transform_0(%arg0: i32) -> (i32, i32) {
    %c0_i32 = arith.constant 0 : i32
    %c0_i32_0 = arith.constant 0 : i32
    return %arg0, %c0_i32 : i32, i32
  }
  func.func @transform_1(%arg0: i32) -> (i32, i32, i32, i32) {
    %c0_i32 = arith.constant 0 : i32
    %c0_i32_0 = arith.constant 0 : i32
    %c0_i32_1 = arith.constant 0 : i32
    %c0_i32_2 = arith.constant 0 : i32
    %c0_i32_3 = arith.constant 0 : i32
    return %c0_i32, %c0_i32_0, %c0_i32_1, %c0_i32_2 : i32, i32, i32, i32
  }
  func.func @transform_2(%arg0: i32) -> (i32, i32) {
    %c0_i32 = arith.constant 0 : i32
    %c0_i32_0 = arith.constant 0 : i32
    %c0_i32_1 = arith.constant 0 : i32
    return %c0_i32, %c0_i32_0 : i32, i32
  }
  func.func @transform_3(%arg0: i32) -> (i32, i32) {
    %c0_i32 = arith.constant 0 : i32
    %c0_i32_0 = arith.constant 0 : i32
    %c0_i32_1 = arith.constant 0 : i32
    return %c0_i32, %c0_i32_0 : i32, i32
  }
  func.func @transform_4(%arg0: i32) -> (i32, i32) {
    %c0_i32 = arith.constant 0 : i32
    %c0_i32_0 = arith.constant 0 : i32
    %c0_i32_1 = arith.constant 0 : i32
    return %c0_i32, %c0_i32_0 : i32, i32
  }
  func.func @transform_5(%arg0: i32) -> (i32, i32) {
    %c0_i32 = arith.constant 0 : i32
    %c0_i32_0 = arith.constant 0 : i32
    return %arg0, %c0_i32 : i32, i32
  }
}

</mosaic_0001>

<bundles_post_ra>
// kernel: tpu_custom_call.1
= control target key start
LH: loop header
LB: loop body
LE: loop exit
PB: predicated region body
PF: predicated region fallthrough
CT: control target
= control target key end

     0   :  { %10 = vsyncpa [#allocation3], 0  ;;  %s3743_s0 = inlined_call_operand.hbm [shape: f32[16,128], index: 0, kind: input, shape index: {}]   ;;  %s3744_s1 = inlined_call_operand.hbm [shape: bf16[6,3,128,128], index: 1, kind: input, shape index: {}]   ;;  %s3745_s2 = inlined_call_operand.hbm [shape: f32[18,128], index: 2, kind: input, shape index: {}]   ;;  %s3746_s3 = inlined_call_operand.hbm [shape: f32[5,128], index: 3, kind: input, shape index: {}]   ;;  %s3747_s4 = inlined_call_operand.hbm [shape: f32[5,128], index: 4, kind: input, shape index: {}]   ;;  %s3748_s5 = inlined_call_operand.hbm [shape: f32[16,128], index: 5, kind: output, shape index: {}]  }
   0x1   :  { %11 = vsyncpa [#allocation6], 0 }
   0x2   :  { %12 = vsyncpa [#allocation9], 0 }
   0x3   :  { %13 = vsyncpa [#allocation4], 0  ;;  %s3386_s18 = smov [#allocation5]  }
   0x4   :  { %s31_s19 = sshll.u32 %s3386_s18, 4  ;;  %s32_s19 = int_to_ptr.vmem [resolvable:$true] %s31_s19 }
   0x5   :  { %s3266_s20 = scalar_lea.vmem %s32_s19, 18432  ;;  %p3271_p1 = scmp.lt.s32.totalorder %s32_s19, %s32_s19 }
   0x6   :  { %p3267_p0 = scmp.ne.s32.totalorder %s32_s19, %s3266_s20  ;;  %p3272_p2 = scmp.lt.s32.totalorder %s3266_s20, %s3266_s20 }
   0x8   :  { %p3273_p3 = por %p3272_p2, %p3271_p1 }
   0xa   :  { %p3274_p4 = pnand %p3273_p3, %p3267_p0 }
   0xc   :  { %3277 = shalt.err (!%p3274_p4)
}
   0xd   :  { %s3387_s21 = smov 64   ;;  %s3388_s22 = smov 4  }
   0xe   :  { %37 = dma.hbm_to_vmem [thread:$0]  %s3744_s1, 18432, %s32_s19, [#allocation6], %s3387_s21, %s3387_s21, %s3388_s22  }
   0xf   :  { %s3389_s25 = smov [#allocation8]   ;;  %s3390_s27 = smov [#allocation2]  }
  0x10   :  { %s56_s26 = sshll.u32 %s3389_s25, 4  ;;  %s19_s28 = sshll.u32 %s3390_s27, 4  ;;  %s57_s26 = int_to_ptr.vmem [resolvable:$true] %s56_s26  ;;  %s20_s28 = int_to_ptr.vmem [resolvable:$true] %s19_s28 }
  0x11   :  { %s3286_s29 = scalar_lea.vmem %s57_s26, 128  ;;  %p3291_p6 = scmp.lt.s32.totalorder %s57_s26, %s57_s26 }
  0x12   :  { %p3287_p5 = scmp.ne.s32.totalorder %s57_s26, %s3286_s29  ;;  %p3292_p7 = scmp.lt.s32.totalorder %s3286_s29, %s3286_s29 }
  0x14   :  { %p3293_p8 = por %p3292_p7, %p3291_p6 }
  0x16   :  { %p3294_p9 = pnand %p3293_p8, %p3287_p5 }
  0x18   :  { %3297 = shalt.err (!%p3294_p9)
}
  0x19   :  { %59 = dma.hbm_to_vmem [thread:$0]  %s3746_s3, 128, %s57_s26, [#allocation9]  }
  0x1a   :  { %s3306_s7 = scalar_lea.vmem %s20_s28, 256  ;;  %p3311_p11 = scmp.lt.s32.totalorder %s20_s28, %s20_s28 }
  0x1b   :  { %p3307_p10 = scmp.ne.s32.totalorder %s20_s28, %s3306_s7  ;;  %p3312_p12 = scmp.lt.s32.totalorder %s3306_s7, %s3306_s7 }
  0x1d   :  { %p3313_p13 = por %p3312_p12, %p3311_p11 }
  0x1f   :  { %p3314_p0 = pnand %p3313_p13, %p3307_p10 }
  0x21   :  { %3317 = shalt.err (!%p3314_p0)
}
  0x22   :  { %s3391_s1 = smov 128   ;;  %s3392_s8 = smov 8  }
  0x23   :  { %25 = dma.hbm_to_vmem [thread:$0]  %s3743_s0, 256, %s20_s28, [#allocation3], %s3391_s1, %s3391_s1, %s3392_s8  }
  0x24   :  { %s3393_s11 = smov [#allocation7]   ;;  %s3394_s3 = smov [#allocation10]  }
  0x25   :  { %s43_s12 = sshll.u32 %s3393_s11, 4  ;;  %s66_s13 = sshll.u32 %s3394_s3, 4  ;;  %s44_s12 = int_to_ptr.vmem [resolvable:$true] %s43_s12  ;;  %s67_s13 = int_to_ptr.vmem [resolvable:$true] %s66_s13 }
  0x26   :  { %s3326_s14 = scalar_lea.vmem %s44_s12, 384  ;;  %p3331_p2 = scmp.lt.s32.totalorder %s44_s12, %s44_s12 }
  0x27   :  { %p3327_p1 = scmp.ne.s32.totalorder %s44_s12, %s3326_s14  ;;  %p3332_p3 = scmp.lt.s32.totalorder %s3326_s14, %s3326_s14 }
  0x29   :  { %p3333_p4 = por %p3332_p3, %p3331_p2 }
  0x2b   :  { %p3334_p5 = pnand %p3333_p4, %p3327_p1 }
  0x2d   :  { %3337 = shalt.err (!%p3334_p5)
}
  0x2e   :  { %49 = dma.hbm_to_vmem [thread:$0]  %s3745_s2, 384, %s44_s12, [#allocation6], %s3391_s1, %s3391_s1, %s3392_s8  }
  0x2f   :  { %s3346_s0 = scalar_lea.vmem %s67_s13, 128  ;;  %p3351_p7 = scmp.lt.s32.totalorder %s67_s13, %s67_s13 }
  0x30   :  { %p3347_p6 = scmp.ne.s32.totalorder %s67_s13, %s3346_s0  ;;  %p3352_p8 = scmp.lt.s32.totalorder %s3346_s0, %s3346_s0 }
  0x32   :  { %p3353_p9 = por %p3352_p8, %p3351_p7 }
  0x34   :  { %p3354_p10 = pnand %p3353_p9, %p3347_p6 }
  0x36   :  { %3357 = shalt.err (!%p3354_p10)
}
  0x37   :  { %69 = dma.hbm_to_vmem [thread:$0]  %s3747_s4, 128, %s67_s13, [#allocation9]  }
  0x38   :  { %3378 = dma.done.wait [#allocation3], 256  }
  0x39   :  { %3379 = vsyncadd [#allocation3], 4294967040 }
  0x3a   :  { %3380 = dma.done.wait [#allocation6], 18816  }
  0x3b   :  { %3381 = vsyncadd [#allocation6], 4294948480 }
  0x3c   :  { %3382 = dma.done.wait [#allocation9], 256  }
  0x3d   :  { %3383 = vsyncadd [#allocation9], 4294967040  ;;  %v3395_v0 = vmov 0.0   ;;  %vm3396_vm0 = vmmov 0   ;;  %v3094_v1 = vld [vmem:[#allocation5 + $0x38] sm:$0xff]   ;;  %v3095_v2 = vld [vmem:[#allocation5 + $0x30] sm:$0xff]  }
  0x3e   :  { %2722 = vmatprep.subr.bf16.mxu0 %v3395_v0  ;;  %2738 = vmatprep.mubr.msk.bf16.mxu0 %vm3396_vm0, %v3395_v0  ;;  %v3096_v3 = vld [vmem:[#allocation5 + $0x28] sm:$0xff]   ;;  %v3102_v4 = vld [vmem:[#allocation5 + $0x78] sm:$0xff]   ;;  %v3097_v5 = vld [vmem:[#allocation5 + $0x20] sm:$0xff]   ;;  %s3397_s2 = smov [#allocation11]  }
  0x3f   :  { %2742 = vmatprep.subr.bf16.mxu1 %v3395_v0  ;;  %2758 = vmatprep.mubr.msk.bf16.mxu1 %vm3396_vm0, %v3395_v0  ;;  %v3103_v6 = vld [vmem:[#allocation5 + $0x70] sm:$0xff]   ;;  %v3098_v7 = vld [vmem:[#allocation5 + $0x18] sm:$0xff]   ;;  %v3104_v8 = vld [vmem:[#allocation5 + $0x68] sm:$0xff]   ;;  %s2374_s4 = sshll.u32 %s3397_s2, 4  ;;  %s2375_s4 = int_to_ptr.vmem [resolvable:$true] %s2374_s4 }
  0x40   :  { %2723 = vmatpush3.bf16.msra.mxu0 %v3094_v1  ;;  %2743 = vmatpush3.bf16.msra.mxu1 %v3102_v4  ;;  %v3099_v9 = vld [vmem:[#allocation5 + $0x10] sm:$0xff]   ;;  %v3105_v10 = vld [vmem:[#allocation5 + $0x60] sm:$0xff]   ;;  %v3100_v11 = vld [vmem:[#allocation5 + $0x8] sm:$0xff]   ;;  %s3358_s19 = scalar_lea.vmem %s2375_s4, 256  ;;  %p3363_p12 = scmp.lt.s32.totalorder %s2375_s4, %s2375_s4 }
  0x41   :  { %2724 = vmatprep.subr.bf16.mxu0 %v3395_v0  ;;  %2744 = vmatprep.subr.bf16.mxu1 %v3395_v0  ;;  %v3106_v12 = vld [vmem:[#allocation5 + $0x58] sm:$0xff]   ;;  %v3101_v13 = vld [vmem:[#allocation5] sm:$0xff]   ;;  %v3464_v14 = vld [vmem:[#allocation2] sm:$0xff]  ;;  %p3359_p11 = scmp.ne.s32.totalorder %s2375_s4, %s3358_s19  ;;  %p3364_p13 = scmp.lt.s32.totalorder %s3358_s19, %s3358_s19 }
  0x42   :  { %v3466_v15 = vld [vmem:[#allocation2 + $0x8] sm:$0xff]  ;;  %v3107_v17 = vld [vmem:[#allocation5 + $0x50] sm:$0xff]   ;;  %v3108_v18 = vld [vmem:[#allocation5 + $0x48] sm:$0xff]  }
  0x43   :  { %v88_v16 = vpack.c.bf16 %v3466_v15, %v3464_v14  ;;  %v3109_v19 = vld [vmem:[#allocation5 + $0x40] sm:$0xff]   ;;  %v3110_v20 = vld [vmem:[#allocation5 + $0xb8] sm:$0xff]   ;;  %v3111_v21 = vld [vmem:[#allocation5 + $0xb0] sm:$0xff]   ;;  %p3365_p0 = por %p3364_p13, %p3363_p12 }
  0x44   :  { %2725 = vmatpush3.bf16.msra.mxu0 %v3095_v2  ;;  %2745 = vmatpush3.bf16.msra.mxu1 %v3103_v6  ;;  %v3112_v22 = vld [vmem:[#allocation5 + $0xa8] sm:$0xff]   ;;  %v3113_v23 = vld [vmem:[#allocation5 + $0xa0] sm:$0xff]   ;;  %v3114_v24 = vld [vmem:[#allocation5 + $0x98] sm:$0xff]  }
  0x45   :  { %2726 = vmatprep.subr.bf16.mxu0 %v3395_v0  ;;  %2746 = vmatprep.subr.bf16.mxu1 %v3395_v0  ;;  %v2388_v25 = vld [vmem:[#allocation7] ss:$0 sm:$0xff]  ;;  %v3115_v35 = vld [vmem:[#allocation5 + $0x90] sm:$0xff]   ;;  %v3116_v36 = vld [vmem:[#allocation5 + $0x88] sm:$0xff]   ;;  %p3366_p1 = pnand %p3365_p0, %p3359_p11 }
  0x46   :  { %v3117_v37 = vld [vmem:[#allocation5 + $0x80] sm:$0xff]   ;;  %v3118_v62 = vld [vmem:[#allocation5 + $0xf8] sm:$0xff]   ;;  %v3119_v63 = vld [vmem:[#allocation5 + $0xf0] sm:$0xff]  }
  0x47   :  { %v2397_v38 = vld [vmem:[#allocation7 + $0x1] ss:$0 sm:$0xff]  ;;  %v2406_v49 = vld [vmem:[#allocation7 + $0x2] ss:$0 sm:$0xff]  ;;  %v3120_v1 = vld [vmem:[#allocation5 + $0xe8] sm:$0xff]  }
  0x48   :  { %2727 = vmatpush3.bf16.msra.mxu0 %v3096_v3  ;;  %2747 = vmatpush3.bf16.msra.mxu1 %v3104_v8  ;;  %v3121_v2 = vld [vmem:[#allocation5 + $0xe0] sm:$0xff]   ;;  %v3122_v3 = vld [vmem:[#allocation5 + $0xd8] sm:$0xff]   ;;  %v3123_v4 = vld [vmem:[#allocation5 + $0xd0] sm:$0xff]  }
  0x49   :  { %2728 = vmatprep.subr.bf16.mxu0 %v3395_v0  ;;  %2748 = vmatprep.subr.bf16.mxu1 %v3395_v0  ;;  %v3125_v6 = vld [vmem:[#allocation5 + $0xc0] sm:$0xff]   ;;  %v3127_v8 = vld [vmem:[#allocation5 + $0x130] sm:$0xff]  }
  0x4c   :  { %2729 = vmatpush3.bf16.msra.mxu0 %v3097_v5  ;;  %2749 = vmatpush3.bf16.msra.mxu1 %v3105_v10  ;;  %v3124_v5 = vld [vmem:[#allocation5 + $0xc8] sm:$0xff]   ;;  %v3129_v10 = vld [vmem:[#allocation5 + $0x120] sm:$0xff]  }
  0x4d   :  { %2730 = vmatprep.subr.bf16.mxu0 %v3395_v0  ;;  %2750 = vmatprep.subr.bf16.mxu1 %v3395_v0 }
  0x50   :  { %2731 = vmatpush3.bf16.msra.mxu0 %v3098_v7  ;;  %2751 = vmatpush3.bf16.msra.mxu1 %v3106_v12  ;;  %v3126_v7 = vld [vmem:[#allocation5 + $0x138] sm:$0xff]  }
  0x51   :  { %2732 = vmatprep.subr.bf16.mxu0 %v3395_v0  ;;  %2752 = vmatprep.subr.bf16.mxu1 %v3395_v0 }
  0x54   :  { %2733 = vmatpush3.bf16.msra.mxu0 %v3099_v9  ;;  %2753 = vmatpush3.bf16.msra.mxu1 %v3107_v17  ;;  %v3128_v9 = vld [vmem:[#allocation5 + $0x128] sm:$0xff]  }
  0x55   :  { %2734 = vmatprep.subr.bf16.mxu0 %v3395_v0  ;;  %2754 = vmatprep.subr.bf16.mxu1 %v3395_v0 }
  0x58   :  { %2735 = vmatpush3.bf16.msra.mxu0 %v3100_v11  ;;  %2755 = vmatpush3.bf16.msra.mxu1 %v3108_v18  ;;  %v3130_v11 = vld [vmem:[#allocation5 + $0x118] sm:$0xff]  }
  0x59   :  { %2736 = vmatprep.subr.bf16.mxu0 %v3395_v0  ;;  %2756 = vmatprep.subr.bf16.mxu1 %v3395_v0 }
  0x5c   :  { %2737 = vmatpush3.bf16.msra.mxu0 %v3101_v13  ;;  %2757 = vmatpush3.bf16.msra.mxu1 %v3109_v19 }
  0x5d   :  { %2762 = vmatprep.subr.bf16.mxu0 %v3395_v0  ;;  %2782 = vmatprep.subr.bf16.mxu1 %v3395_v0 }
  0x5f   :  { %2739 = vmatmul.mubr.bf16.vlgmr.msra.gmra.mxu0 %v88_v16 }
  0x60   :  { %2778 = vmatprep.mubr.msk.bf16.mxu0 %vm3396_vm0, %v3395_v0  ;;  %2763 = vmatpush3.bf16.msra.mxu0 %v3110_v20 }
  0x61   :  { %2764 = vmatprep.subr.bf16.mxu0 %v3395_v0 }
  0x64   :  { %2765 = vmatpush3.bf16.msra.mxu0 %v3111_v21 }
  0x65   :  { %2766 = vmatprep.subr.bf16.mxu0 %v3395_v0 }
  0x68   :  { %2767 = vmatpush3.bf16.msra.mxu0 %v3112_v22 }
  0x69   :  { %2768 = vmatprep.subr.bf16.mxu0 %v3395_v0 }
  0x6c   :  { %2769 = vmatpush3.bf16.msra.mxu0 %v3113_v23 }
  0x6d   :  { %2770 = vmatprep.subr.bf16.mxu0 %v3395_v0 }
  0x70   :  { %2771 = vmatpush3.bf16.msra.mxu0 %v3114_v24 }
  0x71   :  { %2772 = vmatprep.subr.bf16.mxu0 %v3395_v0 }
  0x74   :  { %2773 = vmatpush3.bf16.msra.mxu0 %v3115_v35 }
  0x75   :  { %2774 = vmatprep.subr.bf16.mxu0 %v3395_v0 }
  0x78   :  { %2775 = vmatpush3.bf16.msra.mxu0 %v3116_v36 }
  0x79   :  { %2776 = vmatprep.subr.bf16.mxu0 %v3395_v0 }
  0x7c   :  { %2777 = vmatpush3.bf16.msra.mxu0 %v3117_v37 }
  0x7d   :  { %2802 = vmatprep.subr.bf16.mxu0 %v3395_v0 }
 0x11f   :  { %v192_v26 = vpop.f32.mrf.mxu0 }
 0x120   :  { %v193_v28 = vadd.f32 %v2388_v25, %v192_v26  ;;  %v2415_v26 = vld [vmem:[#allocation8] ss:$0 sm:$0xff] }
 0x121   :  { %v2740_v27 = vpop.f32.mrf.mxu0 }
 0x122   :  { %v199_v32 = vmax.f32 %v193_v28, 0.0 }
 0x123   :  { %v195_v29 = vpop.f32.mrf.mxu0 }
 0x124   :  { %v196_v30 = vadd.f32 %v2388_v25, %v195_v29 }
 0x125   :  { %v2741_v31 = vpop.f32.mrf.mxu0 }
 0x126   :  { %v200_v33 = vmax.f32 %v196_v30, 0.0  ;;  %v2416_v31 = vld [vmem:[#allocation10] ss:$0 sm:$0xff] }
 0x128   :  { %v201_v34 = vpack.c.bf16 %v200_v33, %v199_v32 }
 0x12a   :  { %2759 = vmatmul.mubr.bf16.vlgmr.msra.gmra.mxu1 %v201_v34 }
 0x12b   :  { %2798 = vmatprep.mubr.msk.bf16.mxu1 %vm3396_vm0, %v3395_v0  ;;  %2783 = vmatpush3.bf16.msra.mxu1 %v3118_v62  ;;  %v2426_v62 = vld [vmem:[#allocation7 + $0x4] ss:$0 sm:$0xff] }
 0x12c   :  { %2784 = vmatprep.subr.bf16.mxu1 %v3395_v0 }
 0x12f   :  { %2785 = vmatpush3.bf16.msra.mxu1 %v3119_v63 }
 0x130   :  { %2786 = vmatprep.subr.bf16.mxu1 %v3395_v0 }
 0x133   :  { %2787 = vmatpush3.bf16.msra.mxu1 %v3120_v1 }
 0x134   :  { %2788 = vmatprep.subr.bf16.mxu1 %v3395_v0 }
 0x137   :  { %2789 = vmatpush3.bf16.msra.mxu1 %v3121_v2 }
 0x138   :  { %2790 = vmatprep.subr.bf16.mxu1 %v3395_v0 }
 0x13b   :  { %2791 = vmatpush3.bf16.msra.mxu1 %v3122_v3 }
 0x13c   :  { %2792 = vmatprep.subr.bf16.mxu1 %v3395_v0 }
 0x13f   :  { %2793 = vmatpush3.bf16.msra.mxu1 %v3123_v4 }
 0x140   :  { %2794 = vmatprep.subr.bf16.mxu1 %v3395_v0 }
 0x143   :  { %2795 = vmatpush3.bf16.msra.mxu1 %v3124_v5 }
 0x144   :  { %2796 = vmatprep.subr.bf16.mxu1 %v3395_v0 }
 0x147   :  { %2797 = vmatpush3.bf16.msra.mxu1 %v3125_v6 }
 0x148   :  { %2822 = vmatprep.subr.bf16.mxu1 %v3395_v0 }
 0x1ea   :  { %v306_v39 = vpop.f32.mrf.mxu1 }
 0x1eb   :  { %v307_v41 = vadd.f32 %v2397_v38, %v306_v39 }
 0x1ec   :  { %v2760_v40 = vpop.f32.mrf.mxu1 }
 0x1ed   :  { %v313_v45 = vmax.f32 %v307_v41, 0.0  ;;  %v3131_v41 = vld [vmem:[#allocation5 + $0x110] sm:$0xff]  }
 0x1ee   :  { %v309_v42 = vpop.f32.mrf.mxu1 }
 0x1ef   :  { %v310_v43 = vadd.f32 %v2397_v38, %v309_v42  ;;  %v3132_v42 = vld [vmem:[#allocation5 + $0x108] sm:$0xff]  }
 0x1f0   :  { %v2761_v44 = vpop.f32.mrf.mxu1 }
 0x1f1   :  { %v314_v46 = vmax.f32 %v310_v43, 0.0  ;;  %v3133_v43 = vld [vmem:[#allocation5 + $0x100] sm:$0xff]   ;;  %v3134_v44 = vld [vmem:[#allocation5 + $0x178] sm:$0xff]  }
 0x1f3   :  { %v315_v47 = vpack.c.bf16 %v314_v46, %v313_v45  ;;  %v3135_v45 = vld [vmem:[#allocation5 + $0x170] sm:$0xff]   ;;  %v3136_v46 = vld [vmem:[#allocation5 + $0x168] sm:$0xff]  }
 0x1f5   :  { %2779 = vmatmul.mubr.bf16.vlgmr.msra.gmra.mxu0 %v315_v47  ;;  %v3137_v47 = vld [vmem:[#allocation5 + $0x160] sm:$0xff]  }
 0x1f6   :  { %2818 = vmatprep.mubr.msk.bf16.mxu0 %vm3396_vm0, %v3395_v0  ;;  %2803 = vmatpush3.bf16.msra.mxu0 %v3126_v7 }
 0x1f7   :  { %2804 = vmatprep.subr.bf16.mxu0 %v3395_v0 }
 0x1fa   :  { %2805 = vmatpush3.bf16.msra.mxu0 %v3127_v8 }
 0x1fb   :  { %2806 = vmatprep.subr.bf16.mxu0 %v3395_v0 }
 0x1fe   :  { %2807 = vmatpush3.bf16.msra.mxu0 %v3128_v9 }
 0x1ff   :  { %2808 = vmatprep.subr.bf16.mxu0 %v3395_v0 }
 0x202   :  { %2809 = vmatpush3.bf16.msra.mxu0 %v3129_v10  ;;  %v2435_v10 = vld [vmem:[#allocation7 + $0x5] ss:$0 sm:$0xff] }
 0x203   :  { %2810 = vmatprep.subr.bf16.mxu0 %v3395_v0 }
 0x206   :  { %2811 = vmatpush3.bf16.msra.mxu0 %v3130_v11 }
 0x207   :  { %2812 = vmatprep.subr.bf16.mxu0 %v3395_v0 }
 0x20a   :  { %2813 = vmatpush3.bf16.msra.mxu0 %v3131_v41 }
 0x20b   :  { %2814 = vmatprep.subr.bf16.mxu0 %v3395_v0 }
 0x20e   :  { %2815 = vmatpush3.bf16.msra.mxu0 %v3132_v42 }
 0x20f   :  { %2816 = vmatprep.subr.bf16.mxu0 %v3395_v0 }
 0x212   :  { %2817 = vmatpush3.bf16.msra.mxu0 %v3133_v43 }
 0x213   :  { %2842 = vmatprep.subr.bf16.mxu0 %v3395_v0 }
 0x2b5   :  { %v420_v48 = vpop.f32.mrf.mxu0 }
 0x2b6   :  { %v421_v52 = vadd.f32 %v2406_v49, %v420_v48  ;;  %v3138_v48 = vld [vmem:[#allocation5 + $0x158] sm:$0xff]  }
 0x2b7   :  { %v2780_v50 = vpop.f32.mrf.mxu0 }
 0x2b9   :  { %v423_v51 = vpop.f32.mrf.mxu0 }
 0x2ba   :  { %v424_v53 = vadd.f32 %v2406_v49, %v423_v51  ;;  %v2417_v49 = vld [vmem:[#allocation7 + $0x3] ss:$0 sm:$0xff] }
 0x2bb   :  { %v2781_v54 = vpop.f32.mrf.mxu0 }
 0x2bc   :  { %v427_v55 = vpack.c.bf16 %v424_v53, %v421_v52 }
 0x2be   :  { %v428_v56 = vunpack.c.l.bf16 %v427_v55  ;;  %v429_v57 = vunpack.c.h.bf16 %v427_v55 }
 0x2c0   :  { %v3492_v58 = vadd.f32 %v428_v56, %v3464_v14  ;;  %v3498_v60 = vadd.f32 %v429_v57, %v3466_v15 }
 0x2c2   :  { %432 = vadd.xlane.f32.xlu0 %v3492_v58  ;;  %v436_v59 = vmul.f32 %v3492_v58, %v3492_v58  ;;  %v437_v61 = vmul.f32 %v3498_v60, %v3498_v60 }
 0x2c4   :  { %438 = vadd.xlane.f32.xlu1 %v436_v59  ;;  %v3139_v59 = vld [vmem:[#allocation5 + $0x150] sm:$0xff]  }
 0x2c6   :  { %434 = vadd.xlane.f32.xlu0 %v3498_v60 }
 0x2c8   :  { %440 = vadd.xlane.f32.xlu1 %v437_v61  ;;  %v3141_v61 = vld [vmem:[#allocation5 + $0x140] sm:$0xff]  }
 0x34b   :  { %v433_v12 = vpop.xlane.xlu0 %432 }
 0x34c   :  { %v442_v13 = vmul.f32 0.0078125, %v433_v12 }
 0x34d   :  { %v439_v14 = vpop.xlane.xlu1 %438 }
 0x34e   :  { %v446_v15 = vmul.f32 %v442_v13, %v442_v13  ;;  %v444_v16 = vmul.f32 0.0078125, %v439_v14 }
 0x34f   :  { %v435_v17 = vpop.xlane.xlu0 %434 }
 0x350   :  { %v448_v18 = vsub.f32 %v444_v16, %v446_v15  ;;  %v443_v19 = vmul.f32 0.0078125, %v435_v17 }
 0x351   :  { %v441_v20 = vpop.xlane.xlu1 %440 }
 0x352   :  { %v450_v21 = vadd.f32 1e-05, %v448_v18  ;;  %v447_v22 = vmul.f32 %v443_v19, %v443_v19  ;;  %v445_v23 = vmul.f32 0.0078125, %v441_v20 }
 0x354   :  { %3238 = vrsqrt.f32 %v450_v21  ;;  %v449_v24 = vsub.f32 %v445_v23, %v447_v22  ;;  %v3142_v23 = vld [vmem:[#allocation5 + $0x1b8] sm:$0xff]  }
 0x356   :  { %v451_v25 = vadd.f32 1e-05, %v449_v24  ;;  %v3143_v24 = vld [vmem:[#allocation5 + $0x1b0] sm:$0xff]  }
 0x358   :  { %3240 = vrsqrt.f32 %v451_v25  ;;  %v3144_v25 = vld [vmem:[#allocation5 + $0x1a8] sm:$0xff]  }
 0x361   :  { %v3239_v27 = vpop.eup %3238 }
 0x362   :  { %v460_v28 = vmul.f32 %v3239_v27, %v2415_v26  ;;  %v3146_v27 = vld [vmem:[#allocation5 + $0x198] sm:$0xff]  }
 0x364   :  { %v464_v29 = vmul.f32 %v460_v28, %v442_v13  ;;  %v462_v35 = vmul.f32 %v460_v28, %v3492_v58  ;;  %v3147_v28 = vld [vmem:[#allocation5 + $0x190] sm:$0xff]  }
 0x365   :  { %v3241_v30 = vpop.eup %3240 }
 0x366   :  { %v461_v32 = vmul.f32 %v3241_v30, %v2415_v26  ;;  %v470_v34 = vsub.f32 %v2416_v31, %v464_v29  ;;  %v3145_v26 = vld [vmem:[#allocation5 + $0x1a0] sm:$0xff]   ;;  %v3148_v29 = vld [vmem:[#allocation5 + $0x188] sm:$0xff]  }
 0x367   :  { %v3149_v30 = vld [vmem:[#allocation5 + $0x180] sm:$0xff]  }
 0x368   :  { %v465_v33 = vmul.f32 %v461_v32, %v443_v19  ;;  %v463_v36 = vmul.f32 %v461_v32, %v3498_v60  ;;  %v3518_v38 = vadd.f32 %v470_v34, %v462_v35  ;;  %v3140_v60 = vld [vmem:[#allocation5 + $0x148] sm:$0xff]   ;;  %v3151_v32 = vld [vmem:[#allocation5 + $0x1f0] sm:$0xff]   ;;  %v3153_v34 = vld [vmem:[#allocation5 + $0x1e0] sm:$0xff]  }
 0x369   :  { %v3154_v35 = vld [vmem:[#allocation5 + $0x1d8] sm:$0xff]  }
 0x36a   :  { %v471_v37 = vsub.f32 %v2416_v31, %v465_v33  ;;  %v3150_v31 = vld [vmem:[#allocation5 + $0x1f8] sm:$0xff]   ;;  %v3152_v33 = vld [vmem:[#allocation5 + $0x1e8] sm:$0xff]  }
 0x36c   :  { %v3520_v39 = vadd.f32 %v471_v37, %v463_v36 }
 0x36e   :  { %v474_v40 = vpack.c.bf16 %v3520_v39, %v3518_v38 }
 0x370   :  { %2799 = vmatmul.mubr.bf16.vlgmr.msra.gmra.mxu1 %v474_v40 }
 0x371   :  { %2838 = vmatprep.mubr.msk.bf16.mxu1 %vm3396_vm0, %v3395_v0  ;;  %2823 = vmatpush3.bf16.msra.mxu1 %v3134_v44 }
 0x372   :  { %2824 = vmatprep.subr.bf16.mxu1 %v3395_v0 }
 0x375   :  { %2825 = vmatpush3.bf16.msra.mxu1 %v3135_v45 }
 0x376   :  { %2826 = vmatprep.subr.bf16.mxu1 %v3395_v0 }
 0x379   :  { %2827 = vmatpush3.bf16.msra.mxu1 %v3136_v46 }
 0x37a   :  { %2828 = vmatprep.subr.bf16.mxu1 %v3395_v0 }
 0x37d   :  { %2829 = vmatpush3.bf16.msra.mxu1 %v3137_v47 }
 0x37e   :  { %2830 = vmatprep.subr.bf16.mxu1 %v3395_v0 }
 0x381   :  { %2831 = vmatpush3.bf16.msra.mxu1 %v3138_v48 }
 0x382   :  { %2832 = vmatprep.subr.bf16.mxu1 %v3395_v0 }
 0x385   :  { %2833 = vmatpush3.bf16.msra.mxu1 %v3139_v59 }
 0x386   :  { %2834 = vmatprep.subr.bf16.mxu1 %v3395_v0 }
 0x389   :  { %2835 = vmatpush3.bf16.msra.mxu1 %v3140_v60 }
 0x38a   :  { %2836 = vmatprep.subr.bf16.mxu1 %v3395_v0 }
 0x38d   :  { %2837 = vmatpush3.bf16.msra.mxu1 %v3141_v61 }
 0x38e   :  { %2862 = vmatprep.subr.bf16.mxu1 %v3395_v0 }
 0x430   :  { %v579_v50 = vpop.f32.mrf.mxu1 }
 0x431   :  { %v580_v52 = vadd.f32 %v2417_v49, %v579_v50  ;;  %v2444_v50 = vld [vmem:[#allocation8 + $0x1] ss:$0 sm:$0xff] }
 0x432   :  { %v2800_v51 = vpop.f32.mrf.mxu1 }
 0x433   :  { %v586_v56 = vmax.f32 %v580_v52, 0.0 }
 0x434   :  { %v582_v53 = vpop.f32.mrf.mxu1 }
 0x435   :  { %v583_v54 = vadd.f32 %v2417_v49, %v582_v53 }
 0x436   :  { %v2801_v55 = vpop.f32.mrf.mxu1 }
 0x437   :  { %v587_v57 = vmax.f32 %v583_v54, 0.0  ;;  %v2445_v54 = vld [vmem:[#allocation10 + $0x1] ss:$0 sm:$0xff] }
 0x439   :  { %v588_v58 = vpack.c.bf16 %v587_v57, %v586_v56 }
 0x43b   :  { %2819 = vmatmul.mubr.bf16.vlgmr.msra.gmra.mxu0 %v588_v58 }
 0x43c   :  { %2858 = vmatprep.mubr.msk.bf16.mxu0 %vm3396_vm0, %v3395_v0  ;;  %2843 = vmatpush3.bf16.msra.mxu0 %v3142_v23  ;;  %v2455_v23 = vld [vmem:[#allocation7 + $0x7] ss:$0 sm:$0xff] }
 0x43d   :  { %2844 = vmatprep.subr.bf16.mxu0 %v3395_v0 }
 0x440   :  { %2845 = vmatpush3.bf16.msra.mxu0 %v3143_v24 }
 0x441   :  { %2846 = vmatprep.subr.bf16.mxu0 %v3395_v0 }
 0x444   :  { %2847 = vmatpush3.bf16.msra.mxu0 %v3144_v25 }
 0x445   :  { %2848 = vmatprep.subr.bf16.mxu0 %v3395_v0 }
 0x448   :  { %2849 = vmatpush3.bf16.msra.mxu0 %v3145_v26 }
 0x449   :  { %2850 = vmatprep.subr.bf16.mxu0 %v3395_v0 }
 0x44c   :  { %2851 = vmatpush3.bf16.msra.mxu0 %v3146_v27 }
 0x44d   :  { %2852 = vmatprep.subr.bf16.mxu0 %v3395_v0 }
 0x450   :  { %2853 = vmatpush3.bf16.msra.mxu0 %v3147_v28 }
 0x451   :  { %2854 = vmatprep.subr.bf16.mxu0 %v3395_v0 }
 0x454   :  { %2855 = vmatpush3.bf16.msra.mxu0 %v3148_v29 }
 0x455   :  { %2856 = vmatprep.subr.bf16.mxu0 %v3395_v0 }
 0x458   :  { %2857 = vmatpush3.bf16.msra.mxu0 %v3149_v30 }
 0x459   :  { %2882 = vmatprep.subr.bf16.mxu0 %v3395_v0 }
 0x4fb   :  { %v693_v63 = vpop.f32.mrf.mxu0 }
 0x4fc   :  { %v694_v2 = vadd.f32 %v2426_v62, %v693_v63 }
 0x4fd   :  { %v2820_v1 = vpop.f32.mrf.mxu0 }
 0x4fe   :  { %v700_v6 = vmax.f32 %v694_v2, 0.0  ;;  %v3155_v2 = vld [vmem:[#allocation5 + $0x1d0] sm:$0xff]  }
 0x4ff   :  { %v696_v3 = vpop.f32.mrf.mxu0 }
 0x500   :  { %v697_v4 = vadd.f32 %v2426_v62, %v696_v3  ;;  %v3156_v3 = vld [vmem:[#allocation5 + $0x1c8] sm:$0xff]  }
 0x501   :  { %v2821_v5 = vpop.f32.mrf.mxu0 }
 0x502   :  { %v701_v7 = vmax.f32 %v697_v4, 0.0  ;;  %v3157_v4 = vld [vmem:[#allocation5 + $0x1c0] sm:$0xff]   ;;  %v3158_v5 = vld [vmem:[#allocation5 + $0x238] sm:$0xff]  }
 0x504   :  { %v702_v8 = vpack.c.bf16 %v701_v7, %v700_v6  ;;  %v3159_v6 = vld [vmem:[#allocation5 + $0x230] sm:$0xff]   ;;  %v3160_v7 = vld [vmem:[#allocation5 + $0x228] sm:$0xff]  }
 0x506   :  { %2839 = vmatmul.mubr.bf16.vlgmr.msra.gmra.mxu1 %v702_v8  ;;  %v3161_v8 = vld [vmem:[#allocation5 + $0x220] sm:$0xff]  }
 0x507   :  { %2878 = vmatprep.mubr.msk.bf16.mxu1 %vm3396_vm0, %v3395_v0  ;;  %2863 = vmatpush3.bf16.msra.mxu1 %v3150_v31 }
 0x508   :  { %2864 = vmatprep.subr.bf16.mxu1 %v3395_v0 }
 0x50b   :  { %2865 = vmatpush3.bf16.msra.mxu1 %v3151_v32 }
 0x50c   :  { %2866 = vmatprep.subr.bf16.mxu1 %v3395_v0 }
 0x50f   :  { %2867 = vmatpush3.bf16.msra.mxu1 %v3152_v33 }
 0x510   :  { %2868 = vmatprep.subr.bf16.mxu1 %v3395_v0 }
 0x513   :  { %2869 = vmatpush3.bf16.msra.mxu1 %v3153_v34  ;;  %v2464_v34 = vld [vmem:[#allocation7 + $0x8] ss:$0 sm:$0xff] }
 0x514   :  { %2870 = vmatprep.subr.bf16.mxu1 %v3395_v0 }
 0x517   :  { %2871 = vmatpush3.bf16.msra.mxu1 %v3154_v35 }
 0x518   :  { %2872 = vmatprep.subr.bf16.mxu1 %v3395_v0 }
 0x51b   :  { %2873 = vmatpush3.bf16.msra.mxu1 %v3155_v2 }
 0x51c   :  { %2874 = vmatprep.subr.bf16.mxu1 %v3395_v0 }
 0x51f   :  { %2875 = vmatpush3.bf16.msra.mxu1 %v3156_v3 }
 0x520   :  { %2876 = vmatprep.subr.bf16.mxu1 %v3395_v0 }
 0x523   :  { %2877 = vmatpush3.bf16.msra.mxu1 %v3157_v4 }
 0x524   :  { %2902 = vmatprep.subr.bf16.mxu1 %v3395_v0 }
 0x5c6   :  { %v807_v9 = vpop.f32.mrf.mxu1 }
 0x5c7   :  { %v808_v13 = vadd.f32 %v2435_v10, %v807_v9  ;;  %v3162_v9 = vld [vmem:[#allocation5 + $0x218] sm:$0xff]  }
 0x5c8   :  { %v2840_v11 = vpop.f32.mrf.mxu1 }
 0x5ca   :  { %v810_v12 = vpop.f32.mrf.mxu1 }
 0x5cb   :  { %v811_v14 = vadd.f32 %v2435_v10, %v810_v12  ;;  %v2446_v10 = vld [vmem:[#allocation7 + $0x6] ss:$0 sm:$0xff] }
 0x5cc   :  { %v2841_v15 = vpop.f32.mrf.mxu1 }
 0x5cd   :  { %v814_v16 = vpack.c.bf16 %v811_v14, %v808_v13 }
 0x5cf   :  { %v815_v17 = vunpack.c.l.bf16 %v814_v16  ;;  %v816_v18 = vunpack.c.h.bf16 %v814_v16 }
 0x5d1   :  { %v3542_v19 = vadd.f32 %v816_v18, %v3520_v39  ;;  %v3545_v20 = vadd.f32 %v815_v17, %v3518_v38 }
 0x5d3   :  { %821 = vadd.xlane.f32.xlu1 %v3542_v19  ;;  %819 = vadd.xlane.f32.xlu0 %v3545_v20  ;;  %v824_v21 = vmul.f32 %v3542_v19, %v3542_v19  ;;  %v823_v22 = vmul.f32 %v3545_v20, %v3545_v20 }
 0x5d7   :  { %827 = vadd.xlane.f32.xlu1 %v824_v21  ;;  %825 = vadd.xlane.f32.xlu0 %v823_v22  ;;  %v3164_v21 = vld [vmem:[#allocation5 + $0x208] sm:$0xff]   ;;  %v3165_v22 = vld [vmem:[#allocation5 + $0x200] sm:$0xff]  }
 0x65c   :  { %v822_v36 = vpop.xlane.xlu1 %821  ;;  %v820_v37 = vpop.xlane.xlu0 %819 }
 0x65d   :  { %v830_v38 = vmul.f32 0.0078125, %v822_v36  ;;  %v829_v39 = vmul.f32 0.0078125, %v820_v37 }
 0x65f   :  { %v834_v42 = vmul.f32 %v830_v38, %v830_v38  ;;  %v833_v43 = vmul.f32 %v829_v39, %v829_v39 }
 0x660   :  { %v828_v40 = vpop.xlane.xlu1 %827  ;;  %v826_v41 = vpop.xlane.xlu0 %825 }
 0x661   :  { %v832_v44 = vmul.f32 0.0078125, %v828_v40  ;;  %v831_v45 = vmul.f32 0.0078125, %v826_v41 }
 0x663   :  { %v836_v46 = vsub.f32 %v832_v44, %v834_v42  ;;  %v835_v47 = vsub.f32 %v831_v45, %v833_v43 }
 0x665   :  { %v838_v48 = vadd.f32 1e-05, %v836_v46  ;;  %v837_v49 = vadd.f32 1e-05, %v835_v47  ;;  %v3166_v47 = vld [vmem:[#allocation5 + $0x278] sm:$0xff]  }
 0x667   :  { %3242 = vrsqrt.f32 %v838_v48  ;;  %v3167_v48 = vld [vmem:[#allocation5 + $0x270] sm:$0xff]  }
 0x668   :  { %3244 = vrsqrt.f32 %v837_v49  ;;  %v3168_v49 = vld [vmem:[#allocation5 + $0x268] sm:$0xff]  }
 0x674   :  { %v3243_v51 = vpop.eup %3242 }
 0x675   :  { %v3245_v52 = vpop.eup %3244  ;;  %v848_v53 = vmul.f32 %v3243_v51, %v2444_v50  ;;  %v3170_v51 = vld [vmem:[#allocation5 + $0x258] sm:$0xff]  }
 0x676   :  { %v847_v55 = vmul.f32 %v3245_v52, %v2444_v50  ;;  %v3169_v50 = vld [vmem:[#allocation5 + $0x260] sm:$0xff]   ;;  %v3171_v52 = vld [vmem:[#allocation5 + $0x250] sm:$0xff]  }
 0x677   :  { %v852_v56 = vmul.f32 %v848_v53, %v830_v38  ;;  %v850_v58 = vmul.f32 %v848_v53, %v3542_v19  ;;  %v3172_v53 = vld [vmem:[#allocation5 + $0x248] sm:$0xff]  }
 0x678   :  { %v851_v57 = vmul.f32 %v847_v55, %v829_v39  ;;  %v849_v60 = vmul.f32 %v847_v55, %v3545_v20  ;;  %v3163_v20 = vld [vmem:[#allocation5 + $0x210] sm:$0xff]   ;;  %v3174_v55 = vld [vmem:[#allocation5 + $0x2b8] sm:$0xff]  }
 0x679   :  { %v858_v59 = vsub.f32 %v2445_v54, %v852_v56  ;;  %v3175_v56 = vld [vmem:[#allocation5 + $0x2b0] sm:$0xff]  }
 0x67a   :  { %v857_v61 = vsub.f32 %v2445_v54, %v851_v57  ;;  %v3173_v54 = vld [vmem:[#allocation5 + $0x240] sm:$0xff]   ;;  %v3176_v57 = vld [vmem:[#allocation5 + $0x2a8] sm:$0xff]  }
 0x67b   :  { %v3568_v62 = vadd.f32 %v858_v59, %v850_v58  ;;  %v3177_v58 = vld [vmem:[#allocation5 + $0x2a0] sm:$0xff]   ;;  %v3178_v59 = vld [vmem:[#allocation5 + $0x298] sm:$0xff]  }
 0x67c   :  { %v3570_v63 = vadd.f32 %v857_v61, %v849_v60 }
 0x67e   :  { %v861_v1 = vpack.c.bf16 %v3568_v62, %v3570_v63 }
 0x680   :  { %2859 = vmatmul.mubr.bf16.vlgmr.msra.gmra.mxu0 %v861_v1 }
 0x681   :  { %2898 = vmatprep.mubr.msk.bf16.mxu0 %vm3396_vm0, %v3395_v0  ;;  %2883 = vmatpush3.bf16.msra.mxu0 %v3158_v5 }
 0x682   :  { %2884 = vmatprep.subr.bf16.mxu0 %v3395_v0 }
 0x685   :  { %2885 = vmatpush3.bf16.msra.mxu0 %v3159_v6 }
 0x686   :  { %2886 = vmatprep.subr.bf16.mxu0 %v3395_v0 }
 0x689   :  { %2887 = vmatpush3.bf16.msra.mxu0 %v3160_v7 }
 0x68a   :  { %2888 = vmatprep.subr.bf16.mxu0 %v3395_v0 }
 0x68d   :  { %2889 = vmatpush3.bf16.msra.mxu0 %v3161_v8 }
 0x68e   :  { %2890 = vmatprep.subr.bf16.mxu0 %v3395_v0 }
 0x691   :  { %2891 = vmatpush3.bf16.msra.mxu0 %v3162_v9 }
 0x692   :  { %2892 = vmatprep.subr.bf16.mxu0 %v3395_v0 }
 0x695   :  { %2893 = vmatpush3.bf16.msra.mxu0 %v3163_v20 }
 0x696   :  { %2894 = vmatprep.subr.bf16.mxu0 %v3395_v0 }
 0x699   :  { %2895 = vmatpush3.bf16.msra.mxu0 %v3164_v21 }
 0x69a   :  { %2896 = vmatprep.subr.bf16.mxu0 %v3395_v0 }
 0x69d   :  { %2897 = vmatpush3.bf16.msra.mxu0 %v3165_v22 }
 0x69e   :  { %2922 = vmatprep.subr.bf16.mxu0 %v3395_v0 }
 0x740   :  { %v966_v11 = vpop.f32.mrf.mxu0 }
 0x741   :  { %v967_v13 = vadd.f32 %v2446_v10, %v966_v11  ;;  %v2473_v11 = vld [vmem:[#allocation8 + $0x2] ss:$0 sm:$0xff] }
 0x742   :  { %v2860_v12 = vpop.f32.mrf.mxu0 }
 0x743   :  { %v973_v17 = vmax.f32 %v967_v13, 0.0 }
 0x744   :  { %v969_v14 = vpop.f32.mrf.mxu0 }
 0x745   :  { %v970_v15 = vadd.f32 %v2446_v10, %v969_v14 }
 0x746   :  { %v2861_v16 = vpop.f32.mrf.mxu0 }
 0x747   :  { %v974_v18 = vmax.f32 %v970_v15, 0.0  ;;  %v2474_v15 = vld [vmem:[#allocation10 + $0x2] ss:$0 sm:$0xff] }
 0x749   :  { %v975_v19 = vpack.c.bf16 %v974_v18, %v973_v17 }
 0x74b   :  { %2879 = vmatmul.mubr.bf16.vlgmr.msra.gmra.mxu1 %v975_v19 }
 0x74c   :  { %2918 = vmatprep.mubr.msk.bf16.mxu1 %vm3396_vm0, %v3395_v0  ;;  %2903 = vmatpush3.bf16.msra.mxu1 %v3166_v47  ;;  %v2484_v47 = vld [vmem:[#allocation7 + $0xa] ss:$0 sm:$0xff] }
 0x74d   :  { %2904 = vmatprep.subr.bf16.mxu1 %v3395_v0 }
 0x750   :  { %2905 = vmatpush3.bf16.msra.mxu1 %v3167_v48 }
 0x751   :  { %2906 = vmatprep.subr.bf16.mxu1 %v3395_v0 }
 0x754   :  { %2907 = vmatpush3.bf16.msra.mxu1 %v3168_v49 }
 0x755   :  { %2908 = vmatprep.subr.bf16.mxu1 %v3395_v0 }
 0x758   :  { %2909 = vmatpush3.bf16.msra.mxu1 %v3169_v50 }
 0x759   :  { %2910 = vmatprep.subr.bf16.mxu1 %v3395_v0 }
 0x75c   :  { %2911 = vmatpush3.bf16.msra.mxu1 %v3170_v51 }
 0x75d   :  { %2912 = vmatprep.subr.bf16.mxu1 %v3395_v0 }
 0x760   :  { %2913 = vmatpush3.bf16.msra.mxu1 %v3171_v52 }
 0x761   :  { %2914 = vmatprep.subr.bf16.mxu1 %v3395_v0 }
 0x764   :  { %2915 = vmatpush3.bf16.msra.mxu1 %v3172_v53 }
 0x765   :  { %2916 = vmatprep.subr.bf16.mxu1 %v3395_v0 }
 0x768   :  { %2917 = vmatpush3.bf16.msra.mxu1 %v3173_v54 }
 0x769   :  { %2942 = vmatprep.subr.bf16.mxu1 %v3395_v0 }
 0x80b   :  { %v1080_v24 = vpop.f32.mrf.mxu1 }
 0x80c   :  { %v1081_v26 = vadd.f32 %v2455_v23, %v1080_v24 }
 0x80d   :  { %v2880_v25 = vpop.f32.mrf.mxu1 }
 0x80e   :  { %v1087_v30 = vmax.f32 %v1081_v26, 0.0  ;;  %v3179_v26 = vld [vmem:[#allocation5 + $0x290] sm:$0xff]  }
 0x80f   :  { %v1083_v27 = vpop.f32.mrf.mxu1 }
 0x810   :  { %v1084_v28 = vadd.f32 %v2455_v23, %v1083_v27  ;;  %v3180_v27 = vld [vmem:[#allocation5 + $0x288] sm:$0xff]  }
 0x811   :  { %v2881_v29 = vpop.f32.mrf.mxu1 }
 0x812   :  { %v1088_v31 = vmax.f32 %v1084_v28, 0.0  ;;  %v3181_v28 = vld [vmem:[#allocation5 + $0x280] sm:$0xff]   ;;  %v3182_v29 = vld [vmem:[#allocation5 + $0x2f8] sm:$0xff]  }
 0x814   :  { %v1089_v32 = vpack.c.bf16 %v1088_v31, %v1087_v30  ;;  %v3183_v30 = vld [vmem:[#allocation5 + $0x2f0] sm:$0xff]   ;;  %v3184_v31 = vld [vmem:[#allocation5 + $0x2e8] sm:$0xff]  }
 0x816   :  { %2899 = vmatmul.mubr.bf16.vlgmr.msra.gmra.mxu0 %v1089_v32  ;;  %v3185_v32 = vld [vmem:[#allocation5 + $0x2e0] sm:$0xff]  }
 0x817   :  { %2938 = vmatprep.mubr.msk.bf16.mxu0 %vm3396_vm0, %v3395_v0  ;;  %2923 = vmatpush3.bf16.msra.mxu0 %v3174_v55 }
 0x818   :  { %2924 = vmatprep.subr.bf16.mxu0 %v3395_v0 }
 0x81b   :  { %2925 = vmatpush3.bf16.msra.mxu0 %v3175_v56 }
 0x81c   :  { %2926 = vmatprep.subr.bf16.mxu0 %v3395_v0 }
 0x81f   :  { %2927 = vmatpush3.bf16.msra.mxu0 %v3176_v57 }
 0x820   :  { %2928 = vmatprep.subr.bf16.mxu0 %v3395_v0 }
 0x823   :  { %2929 = vmatpush3.bf16.msra.mxu0 %v3177_v58  ;;  %v2493_v58 = vld [vmem:[#allocation7 + $0xb] ss:$0 sm:$0xff] }
 0x824   :  { %2930 = vmatprep.subr.bf16.mxu0 %v3395_v0 }
 0x827   :  { %2931 = vmatpush3.bf16.msra.mxu0 %v3178_v59 }
 0x828   :  { %2932 = vmatprep.subr.bf16.mxu0 %v3395_v0 }
 0x82b   :  { %2933 = vmatpush3.bf16.msra.mxu0 %v3179_v26 }
 0x82c   :  { %2934 = vmatprep.subr.bf16.mxu0 %v3395_v0 }
 0x82f   :  { %2935 = vmatpush3.bf16.msra.mxu0 %v3180_v27 }
 0x830   :  { %2936 = vmatprep.subr.bf16.mxu0 %v3395_v0 }
 0x833   :  { %2937 = vmatpush3.bf16.msra.mxu0 %v3181_v28 }
 0x834   :  { %2962 = vmatprep.subr.bf16.mxu0 %v3395_v0 }
 0x8d6   :  { %v1194_v33 = vpop.f32.mrf.mxu0 }
 0x8d7   :  { %v1195_v37 = vadd.f32 %v2464_v34, %v1194_v33  ;;  %v3186_v33 = vld [vmem:[#allocation5 + $0x2d8] sm:$0xff]  }
 0x8d8   :  { %v2900_v35 = vpop.f32.mrf.mxu0 }
 0x8da   :  { %v1197_v36 = vpop.f32.mrf.mxu0 }
 0x8db   :  { %v1198_v38 = vadd.f32 %v2464_v34, %v1197_v36  ;;  %v2475_v34 = vld [vmem:[#allocation7 + $0x9] ss:$0 sm:$0xff] }
 0x8dc   :  { %v2901_v39 = vpop.f32.mrf.mxu0 }
 0x8dd   :  { %v1201_v40 = vpack.c.bf16 %v1198_v38, %v1195_v37 }
 0x8df   :  { %v1202_v41 = vunpack.c.l.bf16 %v1201_v40  ;;  %v1203_v42 = vunpack.c.h.bf16 %v1201_v40 }
 0x8e1   :  { %v3592_v43 = vadd.f32 %v1203_v42, %v3568_v62  ;;  %v3595_v44 = vadd.f32 %v1202_v41, %v3570_v63 }
 0x8e3   :  { %1208 = vadd.xlane.f32.xlu1 %v3592_v43  ;;  %1206 = vadd.xlane.f32.xlu0 %v3595_v44  ;;  %v1211_v45 = vmul.f32 %v3592_v43, %v3592_v43  ;;  %v1210_v46 = vmul.f32 %v3595_v44, %v3595_v44 }
 0x8e7   :  { %1214 = vadd.xlane.f32.xlu1 %v1211_v45  ;;  %1212 = vadd.xlane.f32.xlu0 %v1210_v46  ;;  %v3188_v45 = vld [vmem:[#allocation5 + $0x2c8] sm:$0xff]   ;;  %v3189_v46 = vld [vmem:[#allocation5 + $0x2c0] sm:$0xff]  }
 0x96c   :  { %v1209_v60 = vpop.xlane.xlu1 %1208  ;;  %v1207_v61 = vpop.xlane.xlu0 %1206 }
 0x96d   :  { %v1217_v62 = vmul.f32 0.0078125, %v1209_v60  ;;  %v1216_v63 = vmul.f32 0.0078125, %v1207_v61 }
 0x96f   :  { %v1221_v3 = vmul.f32 %v1217_v62, %v1217_v62  ;;  %v1220_v4 = vmul.f32 %v1216_v63, %v1216_v63 }
 0x970   :  { %v1215_v1 = vpop.xlane.xlu1 %1214  ;;  %v1213_v2 = vpop.xlane.xlu0 %1212 }
 0x971   :  { %v1219_v5 = vmul.f32 0.0078125, %v1215_v1  ;;  %v1218_v6 = vmul.f32 0.0078125, %v1213_v2 }
 0x973   :  { %v1223_v7 = vsub.f32 %v1219_v5, %v1221_v3  ;;  %v1222_v8 = vsub.f32 %v1218_v6, %v1220_v4 }
 0x975   :  { %v1225_v9 = vadd.f32 1e-05, %v1223_v7  ;;  %v1224_v10 = vadd.f32 1e-05, %v1222_v8  ;;  %v3190_v8 = vld [vmem:[#allocation5 + $0x338] sm:$0xff]  }
 0x977   :  { %3246 = vrsqrt.f32 %v1225_v9  ;;  %v3191_v9 = vld [vmem:[#allocation5 + $0x330] sm:$0xff]  }
 0x978   :  { %3248 = vrsqrt.f32 %v1224_v10  ;;  %v3192_v10 = vld [vmem:[#allocation5 + $0x328] sm:$0xff]  }
 0x984   :  { %v3247_v12 = vpop.eup %3246 }
 0x985   :  { %v3249_v13 = vpop.eup %3248  ;;  %v1235_v14 = vmul.f32 %v3247_v12, %v2473_v11  ;;  %v3194_v12 = vld [vmem:[#allocation5 + $0x318] sm:$0xff]  }
 0x986   :  { %v1234_v16 = vmul.f32 %v3249_v13, %v2473_v11  ;;  %v3193_v11 = vld [vmem:[#allocation5 + $0x320] sm:$0xff]   ;;  %v3195_v13 = vld [vmem:[#allocation5 + $0x310] sm:$0xff]  }
 0x987   :  { %v1239_v17 = vmul.f32 %v1235_v14, %v1217_v62  ;;  %v1237_v19 = vmul.f32 %v1235_v14, %v3592_v43  ;;  %v3196_v14 = vld [vmem:[#allocation5 + $0x308] sm:$0xff]  }
 0x988   :  { %v1238_v18 = vmul.f32 %v1234_v16, %v1216_v63  ;;  %v1236_v21 = vmul.f32 %v1234_v16, %v3595_v44  ;;  %v3187_v44 = vld [vmem:[#allocation5 + $0x2d0] sm:$0xff]   ;;  %v3198_v16 = vld [vmem:[#allocation5 + $0x378] sm:$0xff]  }
 0x989   :  { %v1245_v20 = vsub.f32 %v2474_v15, %v1239_v17  ;;  %v3199_v17 = vld [vmem:[#allocation5 + $0x370] sm:$0xff]  }
 0x98a   :  { %v1244_v22 = vsub.f32 %v2474_v15, %v1238_v18  ;;  %v3197_v15 = vld [vmem:[#allocation5 + $0x300] sm:$0xff]   ;;  %v3200_v18 = vld [vmem:[#allocation5 + $0x368] sm:$0xff]  }
 0x98b   :  { %v3618_v23 = vadd.f32 %v1245_v20, %v1237_v19  ;;  %v3201_v19 = vld [vmem:[#allocation5 + $0x360] sm:$0xff]   ;;  %v3202_v20 = vld [vmem:[#allocation5 + $0x358] sm:$0xff]  }
 0x98c   :  { %v3620_v24 = vadd.f32 %v1244_v22, %v1236_v21 }
 0x98e   :  { %v1248_v25 = vpack.c.bf16 %v3618_v23, %v3620_v24 }
 0x990   :  { %2919 = vmatmul.mubr.bf16.vlgmr.msra.gmra.mxu1 %v1248_v25 }
 0x991   :  { %2958 = vmatprep.mubr.msk.bf16.mxu1 %vm3396_vm0, %v3395_v0  ;;  %2943 = vmatpush3.bf16.msra.mxu1 %v3182_v29 }
 0x992   :  { %2944 = vmatprep.subr.bf16.mxu1 %v3395_v0 }
 0x995   :  { %2945 = vmatpush3.bf16.msra.mxu1 %v3183_v30 }
 0x996   :  { %2946 = vmatprep.subr.bf16.mxu1 %v3395_v0 }
 0x999   :  { %2947 = vmatpush3.bf16.msra.mxu1 %v3184_v31 }
 0x99a   :  { %2948 = vmatprep.subr.bf16.mxu1 %v3395_v0 }
 0x99d   :  { %2949 = vmatpush3.bf16.msra.mxu1 %v3185_v32 }
 0x99e   :  { %2950 = vmatprep.subr.bf16.mxu1 %v3395_v0 }
 0x9a1   :  { %2951 = vmatpush3.bf16.msra.mxu1 %v3186_v33 }
 0x9a2   :  { %2952 = vmatprep.subr.bf16.mxu1 %v3395_v0 }
 0x9a5   :  { %2953 = vmatpush3.bf16.msra.mxu1 %v3187_v44 }
 0x9a6   :  { %2954 = vmatprep.subr.bf16.mxu1 %v3395_v0 }
 0x9a9   :  { %2955 = vmatpush3.bf16.msra.mxu1 %v3188_v45 }
 0x9aa   :  { %2956 = vmatprep.subr.bf16.mxu1 %v3395_v0 }
 0x9ad   :  { %2957 = vmatpush3.bf16.msra.mxu1 %v3189_v46 }
 0x9ae   :  { %2982 = vmatprep.subr.bf16.mxu1 %v3395_v0 }
 0xa50   :  { %v1353_v35 = vpop.f32.mrf.mxu1 }
 0xa51   :  { %v1354_v37 = vadd.f32 %v2475_v34, %v1353_v35  ;;  %v2502_v35 = vld [vmem:[#allocation8 + $0x3] ss:$0 sm:$0xff] }
 0xa52   :  { %v2920_v36 = vpop.f32.mrf.mxu1 }
 0xa53   :  { %v1360_v41 = vmax.f32 %v1354_v37, 0.0 }
 0xa54   :  { %v1356_v38 = vpop.f32.mrf.mxu1 }
 0xa55   :  { %v1357_v39 = vadd.f32 %v2475_v34, %v1356_v38 }
 0xa56   :  { %v2921_v40 = vpop.f32.mrf.mxu1 }
 0xa57   :  { %v1361_v42 = vmax.f32 %v1357_v39, 0.0  ;;  %v2503_v39 = vld [vmem:[#allocation10 + $0x3] ss:$0 sm:$0xff] }
 0xa59   :  { %v1362_v43 = vpack.c.bf16 %v1361_v42, %v1360_v41 }
 0xa5b   :  { %2939 = vmatmul.mubr.bf16.vlgmr.msra.gmra.mxu0 %v1362_v43 }
 0xa5c   :  { %2978 = vmatprep.mubr.msk.bf16.mxu0 %vm3396_vm0, %v3395_v0  ;;  %2963 = vmatpush3.bf16.msra.mxu0 %v3190_v8  ;;  %v2513_v8 = vld [vmem:[#allocation7 + $0xd] ss:$0 sm:$0xff] }
 0xa5d   :  { %2964 = vmatprep.subr.bf16.mxu0 %v3395_v0 }
 0xa60   :  { %2965 = vmatpush3.bf16.msra.mxu0 %v3191_v9 }
 0xa61   :  { %2966 = vmatprep.subr.bf16.mxu0 %v3395_v0 }
 0xa64   :  { %2967 = vmatpush3.bf16.msra.mxu0 %v3192_v10 }
 0xa65   :  { %2968 = vmatprep.subr.bf16.mxu0 %v3395_v0 }
 0xa68   :  { %2969 = vmatpush3.bf16.msra.mxu0 %v3193_v11 }
 0xa69   :  { %2970 = vmatprep.subr.bf16.mxu0 %v3395_v0 }
 0xa6c   :  { %2971 = vmatpush3.bf16.msra.mxu0 %v3194_v12 }
 0xa6d   :  { %2972 = vmatprep.subr.bf16.mxu0 %v3395_v0 }
 0xa70   :  { %2973 = vmatpush3.bf16.msra.mxu0 %v3195_v13 }
 0xa71   :  { %2974 = vmatprep.subr.bf16.mxu0 %v3395_v0 }
 0xa74   :  { %2975 = vmatpush3.bf16.msra.mxu0 %v3196_v14 }
 0xa75   :  { %2976 = vmatprep.subr.bf16.mxu0 %v3395_v0 }
 0xa78   :  { %2977 = vmatpush3.bf16.msra.mxu0 %v3197_v15 }
 0xa79   :  { %3002 = vmatprep.subr.bf16.mxu0 %v3395_v0 }
 0xb1b   :  { %v1467_v48 = vpop.f32.mrf.mxu0 }
 0xb1c   :  { %v1468_v50 = vadd.f32 %v2484_v47, %v1467_v48 }
 0xb1d   :  { %v2940_v49 = vpop.f32.mrf.mxu0 }
 0xb1e   :  { %v1474_v54 = vmax.f32 %v1468_v50, 0.0  ;;  %v3203_v50 = vld [vmem:[#allocation5 + $0x350] sm:$0xff]  }
 0xb1f   :  { %v1470_v51 = vpop.f32.mrf.mxu0 }
 0xb20   :  { %v1471_v52 = vadd.f32 %v2484_v47, %v1470_v51  ;;  %v3204_v51 = vld [vmem:[#allocation5 + $0x348] sm:$0xff]  }
 0xb21   :  { %v2941_v53 = vpop.f32.mrf.mxu0 }
 0xb22   :  { %v1475_v55 = vmax.f32 %v1471_v52, 0.0  ;;  %v3205_v52 = vld [vmem:[#allocation5 + $0x340] sm:$0xff]   ;;  %v3206_v53 = vld [vmem:[#allocation5 + $0x3b8] sm:$0xff]  }
 0xb24   :  { %v1476_v56 = vpack.c.bf16 %v1475_v55, %v1474_v54  ;;  %v3207_v54 = vld [vmem:[#allocation5 + $0x3b0] sm:$0xff]   ;;  %v3208_v55 = vld [vmem:[#allocation5 + $0x3a8] sm:$0xff]  }
 0xb26   :  { %2959 = vmatmul.mubr.bf16.vlgmr.msra.gmra.mxu1 %v1476_v56  ;;  %v3209_v56 = vld [vmem:[#allocation5 + $0x3a0] sm:$0xff]  }
 0xb27   :  { %2998 = vmatprep.mubr.msk.bf16.mxu1 %vm3396_vm0, %v3395_v0  ;;  %2983 = vmatpush3.bf16.msra.mxu1 %v3198_v16 }
 0xb28   :  { %2984 = vmatprep.subr.bf16.mxu1 %v3395_v0 }
 0xb2b   :  { %2985 = vmatpush3.bf16.msra.mxu1 %v3199_v17 }
 0xb2c   :  { %2986 = vmatprep.subr.bf16.mxu1 %v3395_v0 }
 0xb2f   :  { %2987 = vmatpush3.bf16.msra.mxu1 %v3200_v18 }
 0xb30   :  { %2988 = vmatprep.subr.bf16.mxu1 %v3395_v0 }
 0xb33   :  { %2989 = vmatpush3.bf16.msra.mxu1 %v3201_v19  ;;  %v2522_v19 = vld [vmem:[#allocation7 + $0xe] ss:$0 sm:$0xff] }
 0xb34   :  { %2990 = vmatprep.subr.bf16.mxu1 %v3395_v0 }
 0xb37   :  { %2991 = vmatpush3.bf16.msra.mxu1 %v3202_v20 }
 0xb38   :  { %2992 = vmatprep.subr.bf16.mxu1 %v3395_v0 }
 0xb3b   :  { %2993 = vmatpush3.bf16.msra.mxu1 %v3203_v50 }
 0xb3c   :  { %2994 = vmatprep.subr.bf16.mxu1 %v3395_v0 }
 0xb3f   :  { %2995 = vmatpush3.bf16.msra.mxu1 %v3204_v51 }
 0xb40   :  { %2996 = vmatprep.subr.bf16.mxu1 %v3395_v0 }
 0xb43   :  { %2997 = vmatpush3.bf16.msra.mxu1 %v3205_v52 }
 0xb44   :  { %3022 = vmatprep.subr.bf16.mxu1 %v3395_v0 }
 0xbe6   :  { %v1581_v57 = vpop.f32.mrf.mxu1 }
 0xbe7   :  { %v1582_v61 = vadd.f32 %v2493_v58, %v1581_v57  ;;  %v3210_v57 = vld [vmem:[#allocation5 + $0x398] sm:$0xff]  }
 0xbe8   :  { %v2960_v59 = vpop.f32.mrf.mxu1 }
 0xbea   :  { %v1584_v60 = vpop.f32.mrf.mxu1 }
 0xbeb   :  { %v1585_v62 = vadd.f32 %v2493_v58, %v1584_v60  ;;  %v2504_v58 = vld [vmem:[#allocation7 + $0xc] ss:$0 sm:$0xff] }
 0xbec   :  { %v2961_v63 = vpop.f32.mrf.mxu1 }
 0xbed   :  { %v1588_v1 = vpack.c.bf16 %v1585_v62, %v1582_v61 }
 0xbef   :  { %v1589_v2 = vunpack.c.l.bf16 %v1588_v1  ;;  %v1590_v3 = vunpack.c.h.bf16 %v1588_v1 }
 0xbf1   :  { %v3642_v4 = vadd.f32 %v1590_v3, %v3618_v23  ;;  %v3645_v5 = vadd.f32 %v1589_v2, %v3620_v24 }
 0xbf3   :  { %1595 = vadd.xlane.f32.xlu1 %v3642_v4  ;;  %1593 = vadd.xlane.f32.xlu0 %v3645_v5  ;;  %v1598_v6 = vmul.f32 %v3642_v4, %v3642_v4  ;;  %v1597_v7 = vmul.f32 %v3645_v5, %v3645_v5 }
 0xbf7   :  { %1601 = vadd.xlane.f32.xlu1 %v1598_v6  ;;  %1599 = vadd.xlane.f32.xlu0 %v1597_v7  ;;  %v3212_v6 = vld [vmem:[#allocation5 + $0x388] sm:$0xff]   ;;  %v3213_v7 = vld [vmem:[#allocation5 + $0x380] sm:$0xff]  }
 0xc7c   :  { %v1596_v21 = vpop.xlane.xlu1 %1595  ;;  %v1594_v22 = vpop.xlane.xlu0 %1593 }
 0xc7d   :  { %v1604_v23 = vmul.f32 0.0078125, %v1596_v21  ;;  %v1603_v24 = vmul.f32 0.0078125, %v1594_v22 }
 0xc7f   :  { %v1608_v27 = vmul.f32 %v1604_v23, %v1604_v23  ;;  %v1607_v28 = vmul.f32 %v1603_v24, %v1603_v24 }
 0xc80   :  { %v1602_v25 = vpop.xlane.xlu1 %1601  ;;  %v1600_v26 = vpop.xlane.xlu0 %1599 }
 0xc81   :  { %v1606_v29 = vmul.f32 0.0078125, %v1602_v25  ;;  %v1605_v30 = vmul.f32 0.0078125, %v1600_v26 }
 0xc83   :  { %v1610_v31 = vsub.f32 %v1606_v29, %v1608_v27  ;;  %v1609_v32 = vsub.f32 %v1605_v30, %v1607_v28 }
 0xc85   :  { %v1612_v33 = vadd.f32 1e-05, %v1610_v31  ;;  %v1611_v34 = vadd.f32 1e-05, %v1609_v32  ;;  %v3214_v32 = vld [vmem:[#allocation5 + $0x3f8] sm:$0xff]  }
 0xc87   :  { %3250 = vrsqrt.f32 %v1612_v33  ;;  %v3215_v33 = vld [vmem:[#allocation5 + $0x3f0] sm:$0xff]  }
 0xc88   :  { %3252 = vrsqrt.f32 %v1611_v34  ;;  %v3216_v34 = vld [vmem:[#allocation5 + $0x3e8] sm:$0xff]  }
 0xc94   :  { %v3251_v36 = vpop.eup %3250 }
 0xc95   :  { %v3253_v37 = vpop.eup %3252  ;;  %v1622_v38 = vmul.f32 %v3251_v36, %v2502_v35  ;;  %v3218_v36 = vld [vmem:[#allocation5 + $0x3d8] sm:$0xff]  }
 0xc96   :  { %v1621_v40 = vmul.f32 %v3253_v37, %v2502_v35  ;;  %v3217_v35 = vld [vmem:[#allocation5 + $0x3e0] sm:$0xff]   ;;  %v3219_v37 = vld [vmem:[#allocation5 + $0x3d0] sm:$0xff]  }
 0xc97   :  { %v1626_v41 = vmul.f32 %v1622_v38, %v1604_v23  ;;  %v1624_v43 = vmul.f32 %v1622_v38, %v3642_v4  ;;  %v3220_v38 = vld [vmem:[#allocation5 + $0x3c8] sm:$0xff]  }
 0xc98   :  { %v1625_v42 = vmul.f32 %v1621_v40, %v1603_v24  ;;  %v1623_v45 = vmul.f32 %v1621_v40, %v3645_v5  ;;  %v3211_v5 = vld [vmem:[#allocation5 + $0x390] sm:$0xff]   ;;  %v3222_v40 = vld [vmem:[#allocation5 + $0x438] sm:$0xff]  }
 0xc99   :  { %v1632_v44 = vsub.f32 %v2503_v39, %v1626_v41  ;;  %v3223_v41 = vld [vmem:[#allocation5 + $0x430] sm:$0xff]  }
 0xc9a   :  { %v1631_v46 = vsub.f32 %v2503_v39, %v1625_v42  ;;  %v3221_v39 = vld [vmem:[#allocation5 + $0x3c0] sm:$0xff]   ;;  %v3224_v42 = vld [vmem:[#allocation5 + $0x428] sm:$0xff]  }
 0xc9b   :  { %v3668_v47 = vadd.f32 %v1632_v44, %v1624_v43  ;;  %v3225_v43 = vld [vmem:[#allocation5 + $0x420] sm:$0xff]   ;;  %v3226_v44 = vld [vmem:[#allocation5 + $0x418] sm:$0xff]  }
 0xc9c   :  { %v3670_v48 = vadd.f32 %v1631_v46, %v1623_v45 }
 0xc9e   :  { %v1635_v49 = vpack.c.bf16 %v3668_v47, %v3670_v48 }
 0xca0   :  { %2979 = vmatmul.mubr.bf16.vlgmr.msra.gmra.mxu0 %v1635_v49 }
 0xca1   :  { %3018 = vmatprep.mubr.msk.bf16.mxu0 %vm3396_vm0, %v3395_v0  ;;  %3003 = vmatpush3.bf16.msra.mxu0 %v3206_v53 }
 0xca2   :  { %3004 = vmatprep.subr.bf16.mxu0 %v3395_v0 }
 0xca5   :  { %3005 = vmatpush3.bf16.msra.mxu0 %v3207_v54 }
 0xca6   :  { %3006 = vmatprep.subr.bf16.mxu0 %v3395_v0 }
 0xca9   :  { %3007 = vmatpush3.bf16.msra.mxu0 %v3208_v55 }
 0xcaa   :  { %3008 = vmatprep.subr.bf16.mxu0 %v3395_v0 }
 0xcad   :  { %3009 = vmatpush3.bf16.msra.mxu0 %v3209_v56 }
 0xcae   :  { %3010 = vmatprep.subr.bf16.mxu0 %v3395_v0 }
 0xcb1   :  { %3011 = vmatpush3.bf16.msra.mxu0 %v3210_v57 }
 0xcb2   :  { %3012 = vmatprep.subr.bf16.mxu0 %v3395_v0 }
 0xcb5   :  { %3013 = vmatpush3.bf16.msra.mxu0 %v3211_v5 }
 0xcb6   :  { %3014 = vmatprep.subr.bf16.mxu0 %v3395_v0 }
 0xcb9   :  { %3015 = vmatpush3.bf16.msra.mxu0 %v3212_v6 }
 0xcba   :  { %3016 = vmatprep.subr.bf16.mxu0 %v3395_v0 }
 0xcbd   :  { %3017 = vmatpush3.bf16.msra.mxu0 %v3213_v7 }
 0xcbe   :  { %3042 = vmatprep.subr.bf16.mxu0 %v3395_v0 }
 0xd60   :  { %v1740_v59 = vpop.f32.mrf.mxu0 }
 0xd61   :  { %v1741_v61 = vadd.f32 %v2504_v58, %v1740_v59  ;;  %v2531_v59 = vld [vmem:[#allocation8 + $0x4] ss:$0 sm:$0xff] }
 0xd62   :  { %v2980_v60 = vpop.f32.mrf.mxu0 }
 0xd63   :  { %v1747_v2 = vmax.f32 %v1741_v61, 0.0 }
 0xd64   :  { %v1743_v62 = vpop.f32.mrf.mxu0 }
 0xd65   :  { %v1744_v63 = vadd.f32 %v2504_v58, %v1743_v62 }
 0xd66   :  { %v2981_v1 = vpop.f32.mrf.mxu0 }
 0xd67   :  { %v1748_v3 = vmax.f32 %v1744_v63, 0.0  ;;  %v2532_v63 = vld [vmem:[#allocation10 + $0x4] ss:$0 sm:$0xff] }
 0xd69   :  { %v1749_v4 = vpack.c.bf16 %v1748_v3, %v1747_v2 }
 0xd6b   :  { %2999 = vmatmul.mubr.bf16.vlgmr.msra.gmra.mxu1 %v1749_v4 }
 0xd6c   :  { %3038 = vmatprep.mubr.msk.bf16.mxu1 %vm3396_vm0, %v3395_v0  ;;  %3023 = vmatpush3.bf16.msra.mxu1 %v3214_v32  ;;  %v2542_v32 = vld [vmem:[#allocation7 + $0x10] ss:$0 sm:$0xff] }
 0xd6d   :  { %3024 = vmatprep.subr.bf16.mxu1 %v3395_v0 }
 0xd70   :  { %3025 = vmatpush3.bf16.msra.mxu1 %v3215_v33 }
 0xd71   :  { %3026 = vmatprep.subr.bf16.mxu1 %v3395_v0 }
 0xd74   :  { %3027 = vmatpush3.bf16.msra.mxu1 %v3216_v34 }
 0xd75   :  { %3028 = vmatprep.subr.bf16.mxu1 %v3395_v0 }
 0xd78   :  { %3029 = vmatpush3.bf16.msra.mxu1 %v3217_v35 }
 0xd79   :  { %3030 = vmatprep.subr.bf16.mxu1 %v3395_v0 }
 0xd7c   :  { %3031 = vmatpush3.bf16.msra.mxu1 %v3218_v36 }
 0xd7d   :  { %3032 = vmatprep.subr.bf16.mxu1 %v3395_v0 }
 0xd80   :  { %3033 = vmatpush3.bf16.msra.mxu1 %v3219_v37 }
 0xd81   :  { %3034 = vmatprep.subr.bf16.mxu1 %v3395_v0 }
 0xd84   :  { %3035 = vmatpush3.bf16.msra.mxu1 %v3220_v38 }
 0xd85   :  { %3036 = vmatprep.subr.bf16.mxu1 %v3395_v0 }
 0xd88   :  { %3037 = vmatpush3.bf16.msra.mxu1 %v3221_v39 }
 0xd89   :  { %3062 = vmatprep.subr.bf16.mxu1 %v3395_v0 }
 0xe2b   :  { %v1854_v9 = vpop.f32.mrf.mxu1 }
 0xe2c   :  { %v1855_v11 = vadd.f32 %v2513_v8, %v1854_v9 }
 0xe2d   :  { %v3000_v10 = vpop.f32.mrf.mxu1 }
 0xe2e   :  { %v1861_v15 = vmax.f32 %v1855_v11, 0.0  ;;  %v3227_v11 = vld [vmem:[#allocation5 + $0x410] sm:$0xff]  }
 0xe2f   :  { %v1857_v12 = vpop.f32.mrf.mxu1 }
 0xe30   :  { %v1858_v13 = vadd.f32 %v2513_v8, %v1857_v12  ;;  %v3228_v12 = vld [vmem:[#allocation5 + $0x408] sm:$0xff]  }
 0xe31   :  { %v3001_v14 = vpop.f32.mrf.mxu1 }
 0xe32   :  { %v1862_v16 = vmax.f32 %v1858_v13, 0.0  ;;  %v3229_v13 = vld [vmem:[#allocation5 + $0x400] sm:$0xff]   ;;  %v3230_v14 = vld [vmem:[#allocation5 + $0x478] sm:$0xff]  }
 0xe34   :  { %v1863_v17 = vpack.c.bf16 %v1862_v16, %v1861_v15  ;;  %v3231_v15 = vld [vmem:[#allocation5 + $0x470] sm:$0xff]   ;;  %v3232_v16 = vld [vmem:[#allocation5 + $0x468] sm:$0xff]  }
 0xe36   :  { %3019 = vmatmul.mubr.bf16.vlgmr.msra.gmra.mxu0 %v1863_v17  ;;  %v3233_v17 = vld [vmem:[#allocation5 + $0x460] sm:$0xff]  }
 0xe37   :  { %3058 = vmatprep.mubr.msk.bf16.mxu0 %vm3396_vm0, %v3395_v0  ;;  %3043 = vmatpush3.bf16.msra.mxu0 %v3222_v40 }
 0xe38   :  { %3044 = vmatprep.subr.bf16.mxu0 %v3395_v0 }
 0xe3b   :  { %3045 = vmatpush3.bf16.msra.mxu0 %v3223_v41 }
 0xe3c   :  { %3046 = vmatprep.subr.bf16.mxu0 %v3395_v0 }
 0xe3f   :  { %3047 = vmatpush3.bf16.msra.mxu0 %v3224_v42 }
 0xe40   :  { %3048 = vmatprep.subr.bf16.mxu0 %v3395_v0 }
 0xe43   :  { %3049 = vmatpush3.bf16.msra.mxu0 %v3225_v43  ;;  %v2551_v43 = vld [vmem:[#allocation7 + $0x11] ss:$0 sm:$0xff] }
 0xe44   :  { %3050 = vmatprep.subr.bf16.mxu0 %v3395_v0 }
 0xe47   :  { %3051 = vmatpush3.bf16.msra.mxu0 %v3226_v44 }
 0xe48   :  { %3052 = vmatprep.subr.bf16.mxu0 %v3395_v0 }
 0xe4b   :  { %3053 = vmatpush3.bf16.msra.mxu0 %v3227_v11 }
 0xe4c   :  { %3054 = vmatprep.subr.bf16.mxu0 %v3395_v0 }
 0xe4f   :  { %3055 = vmatpush3.bf16.msra.mxu0 %v3228_v12 }
 0xe50   :  { %3056 = vmatprep.subr.bf16.mxu0 %v3395_v0 }
 0xe53   :  { %3057 = vmatpush3.bf16.msra.mxu0 %v3229_v13 }
 0xef6   :  { %v1968_v18 = vpop.f32.mrf.mxu0 }
 0xef7   :  { %v1969_v22 = vadd.f32 %v2522_v19, %v1968_v18  ;;  %v3234_v18 = vld [vmem:[#allocation5 + $0x458] sm:$0xff]  }
 0xef8   :  { %v3020_v20 = vpop.f32.mrf.mxu0 }
 0xefa   :  { %v1971_v21 = vpop.f32.mrf.mxu0 }
 0xefb   :  { %v1972_v23 = vadd.f32 %v2522_v19, %v1971_v21  ;;  %v2533_v19 = vld [vmem:[#allocation7 + $0xf] ss:$0 sm:$0xff] }
 0xefc   :  { %v3021_v24 = vpop.f32.mrf.mxu0 }
 0xefd   :  { %v1975_v25 = vpack.c.bf16 %v1972_v23, %v1969_v22 }
 0xeff   :  { %v1976_v26 = vunpack.c.l.bf16 %v1975_v25  ;;  %v1977_v27 = vunpack.c.h.bf16 %v1975_v25 }
 0xf01   :  { %v3692_v28 = vadd.f32 %v1977_v27, %v3668_v47  ;;  %v3695_v29 = vadd.f32 %v1976_v26, %v3670_v48 }
 0xf03   :  { %1982 = vadd.xlane.f32.xlu1 %v3692_v28  ;;  %1980 = vadd.xlane.f32.xlu0 %v3695_v29  ;;  %v1985_v30 = vmul.f32 %v3692_v28, %v3692_v28  ;;  %v1984_v31 = vmul.f32 %v3695_v29, %v3695_v29 }
 0xf07   :  { %1988 = vadd.xlane.f32.xlu1 %v1985_v30  ;;  %1986 = vadd.xlane.f32.xlu0 %v1984_v31  ;;  %v3236_v30 = vld [vmem:[#allocation5 + $0x448] sm:$0xff]   ;;  %v3237_v31 = vld [vmem:[#allocation5 + $0x440] sm:$0xff]  }
 0xf8c   :  { %v1983_v45 = vpop.xlane.xlu1 %1982  ;;  %v1981_v46 = vpop.xlane.xlu0 %1980 }
 0xf8d   :  { %v1991_v47 = vmul.f32 0.0078125, %v1983_v45  ;;  %v1990_v48 = vmul.f32 0.0078125, %v1981_v46 }
 0xf8f   :  { %v1995_v51 = vmul.f32 %v1991_v47, %v1991_v47  ;;  %v1994_v52 = vmul.f32 %v1990_v48, %v1990_v48 }
 0xf90   :  { %v1989_v49 = vpop.xlane.xlu1 %1988  ;;  %v1987_v50 = vpop.xlane.xlu0 %1986 }
 0xf91   :  { %v1993_v53 = vmul.f32 0.0078125, %v1989_v49  ;;  %v1992_v54 = vmul.f32 0.0078125, %v1987_v50 }
 0xf93   :  { %v1997_v55 = vsub.f32 %v1993_v53, %v1995_v51  ;;  %v1996_v56 = vsub.f32 %v1992_v54, %v1994_v52 }
 0xf95   :  { %v1999_v57 = vadd.f32 1e-05, %v1997_v55  ;;  %v1998_v58 = vadd.f32 1e-05, %v1996_v56 }
 0xf97   :  { %3254 = vrsqrt.f32 %v1999_v57 }
 0xf98   :  { %3256 = vrsqrt.f32 %v1998_v58 }
 0xfa4   :  { %v3255_v60 = vpop.eup %3254 }
 0xfa5   :  { %v3257_v61 = vpop.eup %3256  ;;  %v2009_v62 = vmul.f32 %v3255_v60, %v2531_v59 }
 0xfa6   :  { %v2008_v1 = vmul.f32 %v3257_v61, %v2531_v59 }
 0xfa7   :  { %v2013_v2 = vmul.f32 %v2009_v62, %v1991_v47  ;;  %v2011_v4 = vmul.f32 %v2009_v62, %v3692_v28 }
 0xfa8   :  { %v2012_v3 = vmul.f32 %v2008_v1, %v1990_v48  ;;  %v2010_v6 = vmul.f32 %v2008_v1, %v3695_v29  ;;  %v3235_v29 = vld [vmem:[#allocation5 + $0x450] sm:$0xff]  }
 0xfa9   :  { %v2019_v5 = vsub.f32 %v2532_v63, %v2013_v2 }
 0xfaa   :  { %v2018_v7 = vsub.f32 %v2532_v63, %v2012_v3 }
 0xfab   :  { %v3718_v8 = vadd.f32 %v2019_v5, %v2011_v4 }
 0xfac   :  { %v3720_v9 = vadd.f32 %v2018_v7, %v2010_v6 }
 0xfae   :  { %v2022_v10 = vpack.c.bf16 %v3718_v8, %v3720_v9 }
 0xfb0   :  { %3039 = vmatmul.mubr.bf16.vlgmr.msra.gmra.mxu1 %v2022_v10 }
 0xfb1   :  { %3078 = vmatprep.mubr.msk.bf16.mxu1 %vm3396_vm0, %v3395_v0  ;;  %3063 = vmatpush3.bf16.msra.mxu1 %v3230_v14 }
 0xfb2   :  { %3064 = vmatprep.subr.bf16.mxu1 %v3395_v0 }
 0xfb5   :  { %3065 = vmatpush3.bf16.msra.mxu1 %v3231_v15 }
 0xfb6   :  { %3066 = vmatprep.subr.bf16.mxu1 %v3395_v0 }
 0xfb9   :  { %3067 = vmatpush3.bf16.msra.mxu1 %v3232_v16 }
 0xfba   :  { %3068 = vmatprep.subr.bf16.mxu1 %v3395_v0 }
 0xfbd   :  { %3069 = vmatpush3.bf16.msra.mxu1 %v3233_v17 }
 0xfbe   :  { %3070 = vmatprep.subr.bf16.mxu1 %v3395_v0 }
 0xfc1   :  { %3071 = vmatpush3.bf16.msra.mxu1 %v3234_v18 }
 0xfc2   :  { %3072 = vmatprep.subr.bf16.mxu1 %v3395_v0 }
 0xfc5   :  { %3073 = vmatpush3.bf16.msra.mxu1 %v3235_v29 }
 0xfc6   :  { %3074 = vmatprep.subr.bf16.mxu1 %v3395_v0 }
 0xfc9   :  { %3075 = vmatpush3.bf16.msra.mxu1 %v3236_v30 }
 0xfca   :  { %3076 = vmatprep.subr.bf16.mxu1 %v3395_v0 }
 0xfcd   :  { %3077 = vmatpush3.bf16.msra.mxu1 %v3237_v31 }
0x1070   :  { %v2127_v20 = vpop.f32.mrf.mxu1 }
0x1071   :  { %v2128_v22 = vadd.f32 %v2533_v19, %v2127_v20 }
0x1072   :  { %v3040_v21 = vpop.f32.mrf.mxu1 }
0x1073   :  { %v2134_v26 = vmax.f32 %v2128_v22, 0.0 }
0x1074   :  { %v2130_v23 = vpop.f32.mrf.mxu1 }
0x1075   :  { %v2131_v24 = vadd.f32 %v2533_v19, %v2130_v23 }
0x1076   :  { %v3041_v25 = vpop.f32.mrf.mxu1 }
0x1077   :  { %v2135_v27 = vmax.f32 %v2131_v24, 0.0 }
0x1079   :  { %v2136_v28 = vpack.c.bf16 %v2135_v27, %v2134_v26 }
0x107b   :  { %3059 = vmatmul.mubr.bf16.vlgmr.msra.gmra.mxu0 %v2136_v28 }
0x113b   :  { %v2241_v33 = vpop.f32.mrf.mxu0 }
0x113c   :  { %v2242_v35 = vadd.f32 %v2542_v32, %v2241_v33 }
0x113d   :  { %v3060_v34 = vpop.f32.mrf.mxu0 }
0x113e   :  { %v2248_v39 = vmax.f32 %v2242_v35, 0.0 }
0x113f   :  { %v2244_v36 = vpop.f32.mrf.mxu0 }
0x1140   :  { %v2245_v37 = vadd.f32 %v2542_v32, %v2244_v36 }
0x1141   :  { %v3061_v38 = vpop.f32.mrf.mxu0 }
0x1142   :  { %v2249_v40 = vmax.f32 %v2245_v37, 0.0 }
0x1144   :  { %v2250_v41 = vpack.c.bf16 %v2249_v40, %v2248_v39 }
0x1146   :  { %3079 = vmatmul.mubr.bf16.vlgmr.msra.gmra.mxu1 %v2250_v41 }
0x1206   :  { %v2355_v42 = vpop.f32.mrf.mxu1 }
0x1207   :  { %v2356_v46 = vadd.f32 %v2551_v43, %v2355_v42 }
0x1208   :  { %v3080_v44 = vpop.f32.mrf.mxu1 }
0x120a   :  { %v2358_v45 = vpop.f32.mrf.mxu1 }
0x120b   :  { %v2359_v47 = vadd.f32 %v2551_v43, %v2358_v45 }
0x120c   :  { %v3081_v0 = vpop.f32.mrf.mxu1 }
0x120d   :  { %v2362_v48 = vpack.c.bf16 %v2359_v47, %v2356_v46 }
0x120f   :  { %v2363_v49 = vunpack.c.l.bf16 %v2362_v48  ;;  %v2364_v50 = vunpack.c.h.bf16 %v2362_v48 }
0x1211   :  { %v2365_v51 = vadd.f32 %v2363_v49, %v3720_v9  ;;  %v2366_v52 = vadd.f32 %v2364_v50, %v3718_v8 }
0x1213   :  { %2367 = vst [vmem:[#allocation11] sm:$0xff] %v2365_v51  ;;  %2368 = vst [vmem:[#allocation11 + $0x8] sm:$0xff] %v2366_v52 }
0x1214   :  { %3369 = shalt.err (!%p3366_p1)
}
0x1215   :  { %2380 = dma.vmem_to_hbm [thread:$0]  %s2375_s4, 256, %s3748_s5, [#allocation4], %s3391_s1, %s3391_s1, %s3392_s8  }
0x1216   :  { %3384 = dma.done.wait [#allocation4], 256  }
0x1217   :  { %3385 = vsyncadd [#allocation4], 4294967040 }
0x1218   :  { %2384 = vsyncpa [#allocation3], 1 }
0x1219   :  { %2385 = vsyncpa [#allocation6], 1 }
0x121a   :  { %2386 = vsyncpa [#allocation9], 1 }
0x121b   :  { %2387 = vsyncpa [#allocation4], 1 }

</bundles_post_ra>
